<compile_context>
chip_gen: v7x
topology: tpu7x:2x2x1
jax: 0.10.0
libtpu: 0.0.40
codegen_flags: <defaults>
</compile_context>

<pallas_src>
import jax
import jax.numpy as jnp
import numpy as np
from jax import lax
from jax.experimental import pallas as pl
from jax.experimental.pallas import tpu as pltpu

_NEG_INF = -10000000000.0  # exact constant used by the PyTorch module


def _make_coatt_kernel(tb, lx_max, le_max, d2):
    f32 = jnp.float32
    bf16 = jnp.bfloat16

    def kernel(lenx_ref, lene_ref, enc_ref, ence_ref, w1_ref, w2_ref, w3_ref,
               b_ref, out_ref):
        base = pl.program_id(0) * tb

        cd_e_parts = []
        cd_q_parts = []
        # Static unroll over the batch block (tb is a small compile-time constant).
        for t in range(tb):
            enc_t = enc_ref[pl.ds(t * lx_max, lx_max), :]     # [Lx, 2H] bf16
            ence_t = ence_ref[pl.ds(t * le_max, le_max), :]   # [Le, 2H] bf16
            lx = lenx_ref[base + t]
            le = lene_ref[base + t]

            # scores LL = encode @ encoder_e^T  -> [Lx, Le] (f32 accumulation)
            ll = lax.dot_general(enc_t, ence_t, (((1,), (1,)), ((), ())),
                                 preferred_element_type=f32)

            # mask rebuilt from lengths (== outer product of prefix masks > 0)
            row = lax.broadcasted_iota(jnp.int32, (lx_max, le_max), 0)
            col = lax.broadcasted_iota(jnp.int32, (lx_max, le_max), 1)
            l = jnp.where((row < lx) & (col < le), ll, f32(_NEG_INF))

            # a_c: softmax over Le (rows), f32
            e_r = jnp.exp(l - jnp.max(l, axis=-1, keepdims=True))
            a_c = e_r * pl.reciprocal(jnp.sum(e_r, axis=-1, keepdims=True),
                                      approx=True)
            # a_q: softmax over Lx (columns), computed without materializing L.T;
            # p[:, m] == a_q[m, :]
            e_c = jnp.exp(l - jnp.max(l, axis=0, keepdims=True))
            p = e_c * pl.reciprocal(jnp.sum(e_c, axis=0, keepdims=True),
                                    approx=True)

            # c_q = a_q @ encode == p^T @ encode (transpose folded into contraction)
            c_q = lax.dot_general(p.astype(bf16), enc_t, (((0,), (0,)), ((), ())),
                                  preferred_element_type=f32)          # [Le, 2H]
            a_c16 = a_c.astype(bf16)
            cd_e_parts.append(jnp.dot(a_c16, ence_t,
                                      preferred_element_type=f32))     # a_c @ enc_e
            cd_q_parts.append(jnp.dot(a_c16, c_q.astype(bf16),
                                      preferred_element_type=f32))     # a_c @ c_q

        # One lane-dense projection for the whole batch block:
        #   out = [enc | a_c@enc_e | a_c@c_q] @ W^T + b, with W^T split row-wise.
        enc_all = enc_ref[...]                                         # [TB*Lx, 2H]
        cd_e = jnp.concatenate(cd_e_parts, axis=0).astype(bf16)
        cd_q = jnp.concatenate(cd_q_parts, axis=0).astype(bf16)
        out = (jnp.dot(enc_all, w1_ref[...], preferred_element_type=f32)
               + jnp.dot(cd_e, w2_ref[...], preferred_element_type=f32)
               + jnp.dot(cd_q, w3_ref[...], preferred_element_type=f32)
               + b_ref[...])
        # NOTE: PyTorch's `co_att.mul(mask_out.float())` is non-inplace and its
        # result is discarded -> no-op, reproduced by omission.
        out_ref[...] = out.astype(out_ref.dtype)

    return kernel


def coatt_pallas(mask_x, mask_e, encode, encoder_e, w, b, *, block_b=4):
    """CoAtt forward.

    mask_x: [B, Lx] bool prefix/padding mask, mask_e: [B, Le] bool,
    encode: [B, Lx, 2H], encoder_e: [B, Le, 2H] (batch-first),
    w: [2H, 6H] PyTorch Linear weight, b: [2H].  Returns [B, Lx, 2H] float32.
    """
    B, Lx, D2 = encode.shape
    Le = encoder_e.shape[1]
    assert encoder_e.shape == (B, Le, D2)
    assert w.shape == (D2, 3 * D2) and b.shape == (D2,)
    tb = min(block_b, B)
    assert B % tb == 0, "batch must be divisible by block_b"
    assert (tb * Lx) % 8 == 0 and (tb * Le) % 8 == 0, "need (block_b*seq) % 8 == 0"

    # Prefix-mask assumption: only per-row valid lengths go to the kernel (SMEM).
    len_x = jnp.sum(mask_x, axis=-1).astype(jnp.int32)
    len_e = jnp.sum(mask_e, axis=-1).astype(jnp.int32)

    # bf16 MXU operands (halves HBM traffic); softmax/masking/accumulation stay f32.
    enc2d = encode.astype(jnp.bfloat16).reshape(B * Lx, D2)
    ence2d = encoder_e.astype(jnp.bfloat16).reshape(B * Le, D2)
    wt = w.T.astype(jnp.bfloat16)                     # [6H, 2H]
    w1, w2, w3 = wt[:D2], wt[D2:2 * D2], wt[2 * D2:]
    b2 = b.astype(jnp.float32).reshape(1, D2)

    grid_spec = pltpu.PrefetchScalarGridSpec(
        num_scalar_prefetch=2,
        grid=(B // tb,),
        in_specs=[
            pl.BlockSpec((tb * Lx, D2), lambda i, lx, le: (i, 0)),   # encode
            pl.BlockSpec((tb * Le, D2), lambda i, lx, le: (i, 0)),   # encoder_e
            pl.BlockSpec((D2, D2), lambda i, lx, le: (0, 0)),        # W^T[:2H]
            pl.BlockSpec((D2, D2), lambda i, lx, le: (0, 0)),        # W^T[2H:4H]
            pl.BlockSpec((D2, D2), lambda i, lx, le: (0, 0)),        # W^T[4H:6H]
            pl.BlockSpec((1, D2), lambda i, lx, le: (0, 0)),         # bias
        ],
        out_specs=pl.BlockSpec((tb * Lx, D2), lambda i, lx, le: (i, 0)),
    )
    out2d = pl.pallas_call(
        _make_coatt_kernel(tb, Lx, Le, D2),
        grid_spec=grid_spec,
        out_shape=jax.ShapeDtypeStruct((B * Lx, D2), jnp.float32),
        compiler_params=pltpu.CompilerParams(dimension_semantics=("parallel",)),
    )(len_x, len_e, enc2d, ence2d, w1, w2, w3, b2)
    return out2d.reshape(B, Lx, D2)


def coatt_ref(mask_x, mask_e, encode, encoder_e, w, b, matmul_dtype=jnp.float32):
    """Pure-JAX reference mirroring the PyTorch forward.  `matmul_dtype` optionally
    mimics the kernel's bf16 MXU operands (softmax / accumulation stay f32)."""
    f32 = jnp.float32
    cast = lambda x: x.astype(matmul_dtype)
    LL = jnp.einsum('bld,bmd->blm', cast(encode), cast(encoder_e),
                    preferred_element_type=f32)
    valid = mask_x[:, :, None] & mask_e[:, None, :]
    L = jnp.where(valid, LL, f32(_NEG_INF))
    a_q = jax.nn.softmax(jnp.swapaxes(L, 1, 2), axis=-1)
    a_c = jax.nn.softmax(L, axis=-1)
    c_q = jnp.einsum('bml,bld->bmd', cast(a_q), cast(encode),
                     preferred_element_type=f32)
    c_q_emb = jnp.concatenate([encoder_e.astype(f32), c_q], axis=-1)
    c_d = jnp.einsum('blm,bmd->bld', cast(a_c), cast(c_q_emb),
                     preferred_element_type=f32)
    co_att = jnp.concatenate([encode.astype(f32), c_d], axis=-1)
    return jnp.einsum('bld,dk->blk', cast(co_att), cast(w.T),
                      preferred_element_type=f32) + b.astype(f32)


if __name__ == "__main__":
    B, Lx, Le, H = 8, 8, 16, 64        # encoder_hidden_size=64 -> 2H = 128 (lane-dense)
    D2, D6 = 2 * H, 6 * H

    key = jax.random.PRNGKey(0)
    k_enc, k_ence, k_w, k_b = jax.random.split(key, 4)
    encode = 0.25 * jax.random.normal(k_enc, (B, Lx, D2), dtype=jnp.float32)
    encoder_e = 0.25 * jax.random.normal(k_ence, (B, Le, D2), dtype=jnp.float32)
    w = jax.random.normal(k_w, (D2, D6), dtype=jnp.float32) / np.sqrt(D6)
    b = 0.01 * jax.random.normal(k_b, (D2,), dtype=jnp.float32)

    # Prefix padding masks: first `len` positions valid.
    len_x = jnp.array([6, 8, 3, 8, 5, 7, 2, 8], dtype=jnp.int32)
    len_e = jnp.array([12, 16, 9, 4, 16, 11, 16, 7], dtype=jnp.int32)
    mask_x = jnp.arange(Lx)[None, :] < len_x[:, None]
    mask_e = jnp.arange(Le)[None, :] < len_e[:, None]

    out = coatt_pallas(mask_x, mask_e, encode, encoder_e, w, b, block_b=4)
    out = jax.block_until_ready(out)

    # Structural check: reference with matching bf16 MXU operands (tight).
    ref_bf16 = coatt_ref(mask_x, mask_e, encode, encoder_e, w, b,
                         matmul_dtype=jnp.bfloat16)
    np.testing.assert_allclose(np.asarray(out), np.asarray(ref_bf16),
                               rtol=1e-2, atol=1e-2)
    # Semantic check vs. the full-f32 PyTorch-equivalent forward (bf16 operands
    # + approx reciprocal account for the tolerance).
    ref_f32 = coatt_ref(mask_x, mask_e, encode, encoder_e, w, b)
    np.testing.assert_allclose(np.asarray(out), np.asarray(ref_f32),
                               rtol=2.5e-2, atol=2.5e-2)

    print("KERNEL_OK")
</pallas_src>

<mosaic_0001>
module attributes {stable_mosaic.version = 11 : i64} {
  func.func @kernel(%arg0: i32, %arg1: memref<8xi32, #tpu.memory_space<smem>>, %arg2: memref<8xi32, #tpu.memory_space<smem>>, %arg3: memref<32x128xbf16, #tpu.memory_space<vmem>>, %arg4: memref<64x128xbf16, #tpu.memory_space<vmem>>, %arg5: memref<128x128xbf16, #tpu.memory_space<vmem>>, %arg6: memref<128x128xbf16, #tpu.memory_space<vmem>>, %arg7: memref<128x128xbf16, #tpu.memory_space<vmem>>, %arg8: memref<1x128xf32, #tpu.memory_space<vmem>>, %arg9: memref<32x128xf32, #tpu.memory_space<vmem>>) attributes {dimension_semantics = [#tpu.dimension_semantics<parallel>], iteration_bounds = array<i64: 2>, scalar_prefetch = 2 : i64, scratch_operands = 0 : i64, tpu.core_type = #tpu.core_type<tc>, window_params = [{transform_indices = @transform_0, window_bounds = array<i64: 32, 128>}, {transform_indices = @transform_1, window_bounds = array<i64: 64, 128>}, {pipeline_mode = #tpu.pipeline_mode<synchronous>, transform_indices = @transform_2, window_bounds = array<i64: 128, 128>}, {pipeline_mode = #tpu.pipeline_mode<synchronous>, transform_indices = @transform_3, window_bounds = array<i64: 128, 128>}, {pipeline_mode = #tpu.pipeline_mode<synchronous>, transform_indices = @transform_4, window_bounds = array<i64: 128, 128>}, {pipeline_mode = #tpu.pipeline_mode<synchronous>, transform_indices = @transform_5, window_bounds = array<i64: 1, 128>}, {transform_indices = @transform_6, window_bounds = array<i64: 32, 128>}]} {
    %c4_i32 = arith.constant 4 : i32
    %0 = arith.muli %arg0, %c4_i32 : i32
    %c0 = arith.constant 0 : index
    %c0_0 = arith.constant 0 : index
    %1 = vector.load %arg3[%c0, %c0_0] : memref<32x128xbf16, #tpu.memory_space<vmem>>, vector<8x128xbf16>
    %c0_1 = arith.constant 0 : index
    %c0_2 = arith.constant 0 : index
    %2 = vector.load %arg4[%c0_1, %c0_2] : memref<64x128xbf16, #tpu.memory_space<vmem>>, vector<16x128xbf16>
    %c0_i32 = arith.constant 0 : i32
    %3 = arith.addi %0, %c0_i32 : i32
    %4 = arith.index_cast %3 : i32 to index
    %5 = memref.load %arg1[%4] : memref<8xi32, #tpu.memory_space<smem>>
    %c0_i32_3 = arith.constant 0 : i32
    %6 = arith.addi %0, %c0_i32_3 : i32
    %7 = arith.index_cast %6 : i32 to index
    %8 = memref.load %arg2[%7] : memref<8xi32, #tpu.memory_space<smem>>
    %cst = arith.constant dense<0.000000e+00> : vector<8x16xf32>
    %9 = tpu.matmul %1, %2, %cst {dimension_numbers = #tpu.dot_dimension_numbers<[1], [1], [0], [0], [0, 0, 1, 0], [], []>} : vector<8x128xbf16>, vector<16x128xbf16>, vector<8x16xf32> -> vector<8x16xf32>
    %10 = tpu.iota {dimensions = array<i32: 0>} : vector<8x16xi32>
    %11 = tpu.iota {dimensions = array<i32: 1>} : vector<8x16xi32>
    %12 = vector.broadcast %5 : i32 to vector<8x16xi32>
    %13 = arith.cmpi slt, %10, %12 : vector<8x16xi32>
    %14 = vector.broadcast %8 : i32 to vector<8x16xi32>
    %15 = arith.cmpi slt, %11, %14 : vector<8x16xi32>
    %16 = arith.andi %13, %15 : vector<8x16xi1>
    %cst_4 = arith.constant -1.000000e+10 : f32
    %17 = vector.broadcast %cst_4 : f32 to vector<8x16xf32>
    %18 = arith.select %16, %9, %17 : vector<8x16xi1>, vector<8x16xf32>
    %cst_5 = arith.constant dense<0xFF800000> : vector<8xf32>
    %19 = vector.multi_reduction <maximumf>, %18, %cst_5 [1] : vector<8x16xf32> to vector<8xf32>
    %20 = vector.shape_cast %19 : vector<8xf32> to vector<8x1xf32>
    %21 = vector.broadcast %20 : vector<8x1xf32> to vector<8x16xf32>
    %22 = arith.subf %18, %21 : vector<8x16xf32>
    %23 = math.exp %22 : vector<8x16xf32>
    %cst_6 = arith.constant dense<0.000000e+00> : vector<8xf32>
    %24 = vector.multi_reduction <add>, %23, %cst_6 [1] : vector<8x16xf32> to vector<8xf32>
    %25 = vector.shape_cast %24 : vector<8xf32> to vector<8x1xf32>
    %26 = tpu.reciprocal %25 {approx = true} : vector<8x1xf32> -> vector<8x1xf32>
    %27 = vector.broadcast %26 : vector<8x1xf32> to vector<8x16xf32>
    %28 = arith.mulf %23, %27 : vector<8x16xf32>
    %cst_7 = arith.constant dense<0xFF800000> : vector<16xf32>
    %29 = vector.multi_reduction <maximumf>, %18, %cst_7 [0] : vector<8x16xf32> to vector<16xf32>
    %30 = vector.shape_cast %29 : vector<16xf32> to vector<1x16xf32>
    %31 = vector.broadcast %30 : vector<1x16xf32> to vector<8x16xf32>
    %32 = arith.subf %18, %31 : vector<8x16xf32>
    %33 = math.exp %32 : vector<8x16xf32>
    %cst_8 = arith.constant dense<0.000000e+00> : vector<16xf32>
    %34 = vector.multi_reduction <add>, %33, %cst_8 [0] : vector<8x16xf32> to vector<16xf32>
    %35 = vector.shape_cast %34 : vector<16xf32> to vector<1x16xf32>
    %36 = tpu.reciprocal %35 {approx = true} : vector<1x16xf32> -> vector<1x16xf32>
    %37 = vector.broadcast %36 : vector<1x16xf32> to vector<8x16xf32>
    %38 = arith.mulf %33, %37 : vector<8x16xf32>
    %39 = arith.truncf %38 : vector<8x16xf32> to vector<8x16xbf16>
    %cst_9 = arith.constant dense<0.000000e+00> : vector<16x128xf32>
    %40 = tpu.matmul %39, %1, %cst_9 {dimension_numbers = #tpu.dot_dimension_numbers<[0], [0], [1], [1], [0, 1, 1, 1], [], []>} : vector<8x16xbf16>, vector<8x128xbf16>, vector<16x128xf32> -> vector<16x128xf32>
    %41 = arith.truncf %28 : vector<8x16xf32> to vector<8x16xbf16>
    %cst_10 = arith.constant dense<0.000000e+00> : vector<8x128xf32>
    %42 = tpu.matmul %41, %2, %cst_10 {dimension_numbers = #tpu.dot_dimension_numbers<[1], [0], [0], [1], [0, 0, 1, 1], [], []>} : vector<8x16xbf16>, vector<16x128xbf16>, vector<8x128xf32> -> vector<8x128xf32>
    %43 = arith.truncf %40 : vector<16x128xf32> to vector<16x128xbf16>
    %cst_11 = arith.constant dense<0.000000e+00> : vector<8x128xf32>
    %44 = tpu.matmul %41, %43, %cst_11 {dimension_numbers = #tpu.dot_dimension_numbers<[1], [0], [0], [1], [0, 0, 1, 1], [], []>} : vector<8x16xbf16>, vector<16x128xbf16>, vector<8x128xf32> -> vector<8x128xf32>
    %c8 = arith.constant 8 : index
    %c0_12 = arith.constant 0 : index
    %45 = vector.load %arg3[%c8, %c0_12] : memref<32x128xbf16, #tpu.memory_space<vmem>>, vector<8x128xbf16>
    %c16 = arith.constant 16 : index
    %c0_13 = arith.constant 0 : index
    %46 = vector.load %arg4[%c16, %c0_13] : memref<64x128xbf16, #tpu.memory_space<vmem>>, vector<16x128xbf16>
    %c1_i32 = arith.constant 1 : i32
    %47 = arith.addi %0, %c1_i32 : i32
    %48 = arith.index_cast %47 : i32 to index
    %49 = memref.load %arg1[%48] : memref<8xi32, #tpu.memory_space<smem>>
    %c1_i32_14 = arith.constant 1 : i32
    %50 = arith.addi %0, %c1_i32_14 : i32
    %51 = arith.index_cast %50 : i32 to index
    %52 = memref.load %arg2[%51] : memref<8xi32, #tpu.memory_space<smem>>
    %cst_15 = arith.constant dense<0.000000e+00> : vector<8x16xf32>
    %53 = tpu.matmul %45, %46, %cst_15 {dimension_numbers = #tpu.dot_dimension_numbers<[1], [1], [0], [0], [0, 0, 1, 0], [], []>} : vector<8x128xbf16>, vector<16x128xbf16>, vector<8x16xf32> -> vector<8x16xf32>
    %54 = tpu.iota {dimensions = array<i32: 0>} : vector<8x16xi32>
    %55 = tpu.iota {dimensions = array<i32: 1>} : vector<8x16xi32>
    %56 = vector.broadcast %49 : i32 to vector<8x16xi32>
    %57 = arith.cmpi slt, %54, %56 : vector<8x16xi32>
    %58 = vector.broadcast %52 : i32 to vector<8x16xi32>
    %59 = arith.cmpi slt, %55, %58 : vector<8x16xi32>
    %60 = arith.andi %57, %59 : vector<8x16xi1>
    %cst_16 = arith.constant -1.000000e+10 : f32
    %61 = vector.broadcast %cst_16 : f32 to vector<8x16xf32>
    %62 = arith.select %60, %53, %61 : vector<8x16xi1>, vector<8x16xf32>
    %cst_17 = arith.constant dense<0xFF800000> : vector<8xf32>
    %63 = vector.multi_reduction <maximumf>, %62, %cst_17 [1] : vector<8x16xf32> to vector<8xf32>
    %64 = vector.shape_cast %63 : vector<8xf32> to vector<8x1xf32>
    %65 = vector.broadcast %64 : vector<8x1xf32> to vector<8x16xf32>
    %66 = arith.subf %62, %65 : vector<8x16xf32>
    %67 = math.exp %66 : vector<8x16xf32>
    %cst_18 = arith.constant dense<0.000000e+00> : vector<8xf32>
    %68 = vector.multi_reduction <add>, %67, %cst_18 [1] : vector<8x16xf32> to vector<8xf32>
    %69 = vector.shape_cast %68 : vector<8xf32> to vector<8x1xf32>
    %70 = tpu.reciprocal %69 {approx = true} : vector<8x1xf32> -> vector<8x1xf32>
    %71 = vector.broadcast %70 : vector<8x1xf32> to vector<8x16xf32>
    %72 = arith.mulf %67, %71 : vector<8x16xf32>
    %cst_19 = arith.constant dense<0xFF800000> : vector<16xf32>
    %73 = vector.multi_reduction <maximumf>, %62, %cst_19 [0] : vector<8x16xf32> to vector<16xf32>
    %74 = vector.shape_cast %73 : vector<16xf32> to vector<1x16xf32>
    %75 = vector.broadcast %74 : vector<1x16xf32> to vector<8x16xf32>
    %76 = arith.subf %62, %75 : vector<8x16xf32>
    %77 = math.exp %76 : vector<8x16xf32>
    %cst_20 = arith.constant dense<0.000000e+00> : vector<16xf32>
    %78 = vector.multi_reduction <add>, %77, %cst_20 [0] : vector<8x16xf32> to vector<16xf32>
    %79 = vector.shape_cast %78 : vector<16xf32> to vector<1x16xf32>
    %80 = tpu.reciprocal %79 {approx = true} : vector<1x16xf32> -> vector<1x16xf32>
    %81 = vector.broadcast %80 : vector<1x16xf32> to vector<8x16xf32>
    %82 = arith.mulf %77, %81 : vector<8x16xf32>
    %83 = arith.truncf %82 : vector<8x16xf32> to vector<8x16xbf16>
    %cst_21 = arith.constant dense<0.000000e+00> : vector<16x128xf32>
    %84 = tpu.matmul %83, %45, %cst_21 {dimension_numbers = #tpu.dot_dimension_numbers<[0], [0], [1], [1], [0, 1, 1, 1], [], []>} : vector<8x16xbf16>, vector<8x128xbf16>, vector<16x128xf32> -> vector<16x128xf32>
    %85 = arith.truncf %72 : vector<8x16xf32> to vector<8x16xbf16>
    %cst_22 = arith.constant dense<0.000000e+00> : vector<8x128xf32>
    %86 = tpu.matmul %85, %46, %cst_22 {dimension_numbers = #tpu.dot_dimension_numbers<[1], [0], [0], [1], [0, 0, 1, 1], [], []>} : vector<8x16xbf16>, vector<16x128xbf16>, vector<8x128xf32> -> vector<8x128xf32>
    %87 = arith.truncf %84 : vector<16x128xf32> to vector<16x128xbf16>
    %cst_23 = arith.constant dense<0.000000e+00> : vector<8x128xf32>
    %88 = tpu.matmul %85, %87, %cst_23 {dimension_numbers = #tpu.dot_dimension_numbers<[1], [0], [0], [1], [0, 0, 1, 1], [], []>} : vector<8x16xbf16>, vector<16x128xbf16>, vector<8x128xf32> -> vector<8x128xf32>
    %c16_24 = arith.constant 16 : index
    %c0_25 = arith.constant 0 : index
    %89 = vector.load %arg3[%c16_24, %c0_25] : memref<32x128xbf16, #tpu.memory_space<vmem>>, vector<8x128xbf16>
    %c32 = arith.constant 32 : index
    %c0_26 = arith.constant 0 : index
    %90 = vector.load %arg4[%c32, %c0_26] : memref<64x128xbf16, #tpu.memory_space<vmem>>, vector<16x128xbf16>
    %c2_i32 = arith.constant 2 : i32
    %91 = arith.addi %0, %c2_i32 : i32
    %92 = arith.index_cast %91 : i32 to index
    %93 = memref.load %arg1[%92] : memref<8xi32, #tpu.memory_space<smem>>
    %c2_i32_27 = arith.constant 2 : i32
    %94 = arith.addi %0, %c2_i32_27 : i32
    %95 = arith.index_cast %94 : i32 to index
    %96 = memref.load %arg2[%95] : memref<8xi32, #tpu.memory_space<smem>>
    %cst_28 = arith.constant dense<0.000000e+00> : vector<8x16xf32>
    %97 = tpu.matmul %89, %90, %cst_28 {dimension_numbers = #tpu.dot_dimension_numbers<[1], [1], [0], [0], [0, 0, 1, 0], [], []>} : vector<8x128xbf16>, vector<16x128xbf16>, vector<8x16xf32> -> vector<8x16xf32>
    %98 = tpu.iota {dimensions = array<i32: 0>} : vector<8x16xi32>
    %99 = tpu.iota {dimensions = array<i32: 1>} : vector<8x16xi32>
    %100 = vector.broadcast %93 : i32 to vector<8x16xi32>
    %101 = arith.cmpi slt, %98, %100 : vector<8x16xi32>
    %102 = vector.broadcast %96 : i32 to vector<8x16xi32>
    %103 = arith.cmpi slt, %99, %102 : vector<8x16xi32>
    %104 = arith.andi %101, %103 : vector<8x16xi1>
    %cst_29 = arith.constant -1.000000e+10 : f32
    %105 = vector.broadcast %cst_29 : f32 to vector<8x16xf32>
    %106 = arith.select %104, %97, %105 : vector<8x16xi1>, vector<8x16xf32>
    %cst_30 = arith.constant dense<0xFF800000> : vector<8xf32>
    %107 = vector.multi_reduction <maximumf>, %106, %cst_30 [1] : vector<8x16xf32> to vector<8xf32>
    %108 = vector.shape_cast %107 : vector<8xf32> to vector<8x1xf32>
    %109 = vector.broadcast %108 : vector<8x1xf32> to vector<8x16xf32>
    %110 = arith.subf %106, %109 : vector<8x16xf32>
    %111 = math.exp %110 : vector<8x16xf32>
    %cst_31 = arith.constant dense<0.000000e+00> : vector<8xf32>
    %112 = vector.multi_reduction <add>, %111, %cst_31 [1] : vector<8x16xf32> to vector<8xf32>
    %113 = vector.shape_cast %112 : vector<8xf32> to vector<8x1xf32>
    %114 = tpu.reciprocal %113 {approx = true} : vector<8x1xf32> -> vector<8x1xf32>
    %115 = vector.broadcast %114 : vector<8x1xf32> to vector<8x16xf32>
    %116 = arith.mulf %111, %115 : vector<8x16xf32>
    %cst_32 = arith.constant dense<0xFF800000> : vector<16xf32>
    %117 = vector.multi_reduction <maximumf>, %106, %cst_32 [0] : vector<8x16xf32> to vector<16xf32>
    %118 = vector.shape_cast %117 : vector<16xf32> to vector<1x16xf32>
    %119 = vector.broadcast %118 : vector<1x16xf32> to vector<8x16xf32>
    %120 = arith.subf %106, %119 : vector<8x16xf32>
    %121 = math.exp %120 : vector<8x16xf32>
    %cst_33 = arith.constant dense<0.000000e+00> : vector<16xf32>
    %122 = vector.multi_reduction <add>, %121, %cst_33 [0] : vector<8x16xf32> to vector<16xf32>
    %123 = vector.shape_cast %122 : vector<16xf32> to vector<1x16xf32>
    %124 = tpu.reciprocal %123 {approx = true} : vector<1x16xf32> -> vector<1x16xf32>
    %125 = vector.broadcast %124 : vector<1x16xf32> to vector<8x16xf32>
    %126 = arith.mulf %121, %125 : vector<8x16xf32>
    %127 = arith.truncf %126 : vector<8x16xf32> to vector<8x16xbf16>
    %cst_34 = arith.constant dense<0.000000e+00> : vector<16x128xf32>
    %128 = tpu.matmul %127, %89, %cst_34 {dimension_numbers = #tpu.dot_dimension_numbers<[0], [0], [1], [1], [0, 1, 1, 1], [], []>} : vector<8x16xbf16>, vector<8x128xbf16>, vector<16x128xf32> -> vector<16x128xf32>
    %129 = arith.truncf %116 : vector<8x16xf32> to vector<8x16xbf16>
    %cst_35 = arith.constant dense<0.000000e+00> : vector<8x128xf32>
    %130 = tpu.matmul %129, %90, %cst_35 {dimension_numbers = #tpu.dot_dimension_numbers<[1], [0], [0], [1], [0, 0, 1, 1], [], []>} : vector<8x16xbf16>, vector<16x128xbf16>, vector<8x128xf32> -> vector<8x128xf32>
    %131 = arith.truncf %128 : vector<16x128xf32> to vector<16x128xbf16>
    %cst_36 = arith.constant dense<0.000000e+00> : vector<8x128xf32>
    %132 = tpu.matmul %129, %131, %cst_36 {dimension_numbers = #tpu.dot_dimension_numbers<[1], [0], [0], [1], [0, 0, 1, 1], [], []>} : vector<8x16xbf16>, vector<16x128xbf16>, vector<8x128xf32> -> vector<8x128xf32>
    %c24 = arith.constant 24 : index
    %c0_37 = arith.constant 0 : index
    %133 = vector.load %arg3[%c24, %c0_37] : memref<32x128xbf16, #tpu.memory_space<vmem>>, vector<8x128xbf16>
    %c48 = arith.constant 48 : index
    %c0_38 = arith.constant 0 : index
    %134 = vector.load %arg4[%c48, %c0_38] : memref<64x128xbf16, #tpu.memory_space<vmem>>, vector<16x128xbf16>
    %c3_i32 = arith.constant 3 : i32
    %135 = arith.addi %0, %c3_i32 : i32
    %136 = arith.index_cast %135 : i32 to index
    %137 = memref.load %arg1[%136] : memref<8xi32, #tpu.memory_space<smem>>
    %c3_i32_39 = arith.constant 3 : i32
    %138 = arith.addi %0, %c3_i32_39 : i32
    %139 = arith.index_cast %138 : i32 to index
    %140 = memref.load %arg2[%139] : memref<8xi32, #tpu.memory_space<smem>>
    %cst_40 = arith.constant dense<0.000000e+00> : vector<8x16xf32>
    %141 = tpu.matmul %133, %134, %cst_40 {dimension_numbers = #tpu.dot_dimension_numbers<[1], [1], [0], [0], [0, 0, 1, 0], [], []>} : vector<8x128xbf16>, vector<16x128xbf16>, vector<8x16xf32> -> vector<8x16xf32>
    %142 = tpu.iota {dimensions = array<i32: 0>} : vector<8x16xi32>
    %143 = tpu.iota {dimensions = array<i32: 1>} : vector<8x16xi32>
    %144 = vector.broadcast %137 : i32 to vector<8x16xi32>
    %145 = arith.cmpi slt, %142, %144 : vector<8x16xi32>
    %146 = vector.broadcast %140 : i32 to vector<8x16xi32>
    %147 = arith.cmpi slt, %143, %146 : vector<8x16xi32>
    %148 = arith.andi %145, %147 : vector<8x16xi1>
    %cst_41 = arith.constant -1.000000e+10 : f32
    %149 = vector.broadcast %cst_41 : f32 to vector<8x16xf32>
    %150 = arith.select %148, %141, %149 : vector<8x16xi1>, vector<8x16xf32>
    %cst_42 = arith.constant dense<0xFF800000> : vector<8xf32>
    %151 = vector.multi_reduction <maximumf>, %150, %cst_42 [1] : vector<8x16xf32> to vector<8xf32>
    %152 = vector.shape_cast %151 : vector<8xf32> to vector<8x1xf32>
    %153 = vector.broadcast %152 : vector<8x1xf32> to vector<8x16xf32>
    %154 = arith.subf %150, %153 : vector<8x16xf32>
    %155 = math.exp %154 : vector<8x16xf32>
    %cst_43 = arith.constant dense<0.000000e+00> : vector<8xf32>
    %156 = vector.multi_reduction <add>, %155, %cst_43 [1] : vector<8x16xf32> to vector<8xf32>
    %157 = vector.shape_cast %156 : vector<8xf32> to vector<8x1xf32>
    %158 = tpu.reciprocal %157 {approx = true} : vector<8x1xf32> -> vector<8x1xf32>
    %159 = vector.broadcast %158 : vector<8x1xf32> to vector<8x16xf32>
    %160 = arith.mulf %155, %159 : vector<8x16xf32>
    %cst_44 = arith.constant dense<0xFF800000> : vector<16xf32>
    %161 = vector.multi_reduction <maximumf>, %150, %cst_44 [0] : vector<8x16xf32> to vector<16xf32>
    %162 = vector.shape_cast %161 : vector<16xf32> to vector<1x16xf32>
    %163 = vector.broadcast %162 : vector<1x16xf32> to vector<8x16xf32>
    %164 = arith.subf %150, %163 : vector<8x16xf32>
    %165 = math.exp %164 : vector<8x16xf32>
    %cst_45 = arith.constant dense<0.000000e+00> : vector<16xf32>
    %166 = vector.multi_reduction <add>, %165, %cst_45 [0] : vector<8x16xf32> to vector<16xf32>
    %167 = vector.shape_cast %166 : vector<16xf32> to vector<1x16xf32>
    %168 = tpu.reciprocal %167 {approx = true} : vector<1x16xf32> -> vector<1x16xf32>
    %169 = vector.broadcast %168 : vector<1x16xf32> to vector<8x16xf32>
    %170 = arith.mulf %165, %169 : vector<8x16xf32>
    %171 = arith.truncf %170 : vector<8x16xf32> to vector<8x16xbf16>
    %cst_46 = arith.constant dense<0.000000e+00> : vector<16x128xf32>
    %172 = tpu.matmul %171, %133, %cst_46 {dimension_numbers = #tpu.dot_dimension_numbers<[0], [0], [1], [1], [0, 1, 1, 1], [], []>} : vector<8x16xbf16>, vector<8x128xbf16>, vector<16x128xf32> -> vector<16x128xf32>
    %173 = arith.truncf %160 : vector<8x16xf32> to vector<8x16xbf16>
    %cst_47 = arith.constant dense<0.000000e+00> : vector<8x128xf32>
    %174 = tpu.matmul %173, %134, %cst_47 {dimension_numbers = #tpu.dot_dimension_numbers<[1], [0], [0], [1], [0, 0, 1, 1], [], []>} : vector<8x16xbf16>, vector<16x128xbf16>, vector<8x128xf32> -> vector<8x128xf32>
    %175 = arith.truncf %172 : vector<16x128xf32> to vector<16x128xbf16>
    %cst_48 = arith.constant dense<0.000000e+00> : vector<8x128xf32>
    %176 = tpu.matmul %173, %175, %cst_48 {dimension_numbers = #tpu.dot_dimension_numbers<[1], [0], [0], [1], [0, 0, 1, 1], [], []>} : vector<8x16xbf16>, vector<16x128xbf16>, vector<8x128xf32> -> vector<8x128xf32>
    %c0_49 = arith.constant 0 : index
    %c0_50 = arith.constant 0 : index
    %177 = vector.load %arg3[%c0_49, %c0_50] : memref<32x128xbf16, #tpu.memory_space<vmem>>, vector<32x128xbf16>
    %178 = tpu.concatenate %42, %86, %130, %174 in 0 : vector<8x128xf32>, vector<8x128xf32>, vector<8x128xf32>, vector<8x128xf32> -> vector<32x128xf32>
    %179 = arith.truncf %178 : vector<32x128xf32> to vector<32x128xbf16>
    %180 = tpu.concatenate %44, %88, %132, %176 in 0 : vector<8x128xf32>, vector<8x128xf32>, vector<8x128xf32>, vector<8x128xf32> -> vector<32x128xf32>
    %181 = arith.truncf %180 : vector<32x128xf32> to vector<32x128xbf16>
    %c0_51 = arith.constant 0 : index
    %c0_52 = arith.constant 0 : index
    %182 = vector.load %arg5[%c0_51, %c0_52] : memref<128x128xbf16, #tpu.memory_space<vmem>>, vector<128x128xbf16>
    %cst_53 = arith.constant dense<0.000000e+00> : vector<32x128xf32>
    %183 = tpu.matmul %177, %182, %cst_53 {dimension_numbers = #tpu.dot_dimension_numbers<[1], [0], [0], [1], [0, 0, 1, 1], [], []>} : vector<32x128xbf16>, vector<128x128xbf16>, vector<32x128xf32> -> vector<32x128xf32>
    %c0_54 = arith.constant 0 : index
    %c0_55 = arith.constant 0 : index
    %184 = vector.load %arg6[%c0_54, %c0_55] : memref<128x128xbf16, #tpu.memory_space<vmem>>, vector<128x128xbf16>
    %cst_56 = arith.constant dense<0.000000e+00> : vector<32x128xf32>
    %185 = tpu.matmul %179, %184, %cst_56 {dimension_numbers = #tpu.dot_dimension_numbers<[1], [0], [0], [1], [0, 0, 1, 1], [], []>} : vector<32x128xbf16>, vector<128x128xbf16>, vector<32x128xf32> -> vector<32x128xf32>
    %186 = arith.addf %183, %185 : vector<32x128xf32>
    %c0_57 = arith.constant 0 : index
    %c0_58 = arith.constant 0 : index
    %187 = vector.load %arg7[%c0_57, %c0_58] : memref<128x128xbf16, #tpu.memory_space<vmem>>, vector<128x128xbf16>
    %cst_59 = arith.constant dense<0.000000e+00> : vector<32x128xf32>
    %188 = tpu.matmul %181, %187, %cst_59 {dimension_numbers = #tpu.dot_dimension_numbers<[1], [0], [0], [1], [0, 0, 1, 1], [], []>} : vector<32x128xbf16>, vector<128x128xbf16>, vector<32x128xf32> -> vector<32x128xf32>
    %189 = arith.addf %186, %188 : vector<32x128xf32>
    %c0_60 = arith.constant 0 : index
    %c0_61 = arith.constant 0 : index
    %190 = vector.load %arg8[%c0_60, %c0_61] : memref<1x128xf32, #tpu.memory_space<vmem>>, vector<1x128xf32>
    %191 = vector.broadcast %190 : vector<1x128xf32> to vector<32x128xf32>
    %192 = arith.addf %189, %191 : vector<32x128xf32>
    %c0_62 = arith.constant 0 : index
    %c0_63 = arith.constant 0 : index
    %193 = vector.load %arg9[%c0_62, %c0_63] : memref<32x128xf32, #tpu.memory_space<vmem>>, vector<32x128xf32>
    tpu.vector_store %arg9[%c0_62, %c0_63], %192 {strides = array<i32>} : memref<32x128xf32, #tpu.memory_space<vmem>>, vector<32x128xf32>,
    return
  }
  func.func @transform_0(%arg0: i32, %arg1: memref<8xi32, #tpu.memory_space<smem>>, %arg2: memref<8xi32, #tpu.memory_space<smem>>) -> (i32, i32) {
    %c0_i32 = arith.constant 0 : i32
    %c0_i32_0 = arith.constant 0 : i32
    return %arg0, %c0_i32 : i32, i32
  }
  func.func @transform_1(%arg0: i32, %arg1: memref<8xi32, #tpu.memory_space<smem>>, %arg2: memref<8xi32, #tpu.memory_space<smem>>) -> (i32, i32) {
    %c0_i32 = arith.constant 0 : i32
    %c0_i32_0 = arith.constant 0 : i32
    return %arg0, %c0_i32 : i32, i32
  }
  func.func @transform_2(%arg0: i32, %arg1: memref<8xi32, #tpu.memory_space<smem>>, %arg2: memref<8xi32, #tpu.memory_space<smem>>) -> (i32, i32) {
    %c0_i32 = arith.constant 0 : i32
    %c0_i32_0 = arith.constant 0 : i32
    %c0_i32_1 = arith.constant 0 : i32
    return %c0_i32, %c0_i32_0 : i32, i32
  }
  func.func @transform_3(%arg0: i32, %arg1: memref<8xi32, #tpu.memory_space<smem>>, %arg2: memref<8xi32, #tpu.memory_space<smem>>) -> (i32, i32) {
    %c0_i32 = arith.constant 0 : i32
    %c0_i32_0 = arith.constant 0 : i32
    %c0_i32_1 = arith.constant 0 : i32
    return %c0_i32, %c0_i32_0 : i32, i32
  }
  func.func @transform_4(%arg0: i32, %arg1: memref<8xi32, #tpu.memory_space<smem>>, %arg2: memref<8xi32, #tpu.memory_space<smem>>) -> (i32, i32) {
    %c0_i32 = arith.constant 0 : i32
    %c0_i32_0 = arith.constant 0 : i32
    %c0_i32_1 = arith.constant 0 : i32
    return %c0_i32, %c0_i32_0 : i32, i32
  }
  func.func @transform_5(%arg0: i32, %arg1: memref<8xi32, #tpu.memory_space<smem>>, %arg2: memref<8xi32, #tpu.memory_space<smem>>) -> (i32, i32) {
    %c0_i32 = arith.constant 0 : i32
    %c0_i32_0 = arith.constant 0 : i32
    %c0_i32_1 = arith.constant 0 : i32
    return %c0_i32, %c0_i32_0 : i32, i32
  }
  func.func @transform_6(%arg0: i32, %arg1: memref<8xi32, #tpu.memory_space<smem>>, %arg2: memref<8xi32, #tpu.memory_space<smem>>) -> (i32, i32) {
    %c0_i32 = arith.constant 0 : i32
    %c0_i32_0 = arith.constant 0 : i32
    return %arg0, %c0_i32 : i32, i32
  }
}

</mosaic_0001>

<bundles_post_ra>
// kernel: tpu_custom_call.1
= control target key start
LH: loop header
LB: loop body
LE: loop exit
PB: predicated region body
PF: predicated region fallthrough
CT: control target
= control target key end

     0   :  { %s3088_s0 = inlined_call_operand.hbm [shape: s32[8], index: 0, kind: input, shape index: {}]   ;;  %s3089_s2 = inlined_call_operand.hbm [shape: bf16[64,128], index: 2, kind: input, shape index: {}]   ;;  %s3090_s3 = inlined_call_operand.hbm [shape: bf16[128,128], index: 3, kind: input, shape index: {}]   ;;  %s3091_s4 = inlined_call_operand.hbm [shape: bf16[128,128], index: 4, kind: input, shape index: {}]   ;;  %s3092_s5 = inlined_call_operand.hbm [shape: bf16[128,128], index: 5, kind: input, shape index: {}]   ;;  %s3093_s6 = inlined_call_operand.hbm [shape: bf16[128,128], index: 6, kind: input, shape index: {}]   ;;  %s3094_s7 = inlined_call_operand.vmem [shape: f32[1,128], index: 7, kind: input, shape index: {}]   ;;  %s3095_s8 = inlined_call_operand.hbm [shape: f32[64,128], index: 8, kind: output, shape index: {}]   ;;  %s3096_s1 = inlined_call_operand.vmem [shape: s32[8], index: 1, kind: input, shape index: {}]  }
   0x1   :  { %3102 = sst [smem:[#allocation21_spill]] %s3089_s2  ;;  %s2283_s29 = scalar_lea.hbm %s3088_s0, 16 }
   0x2   :  { %3103 = sst [smem:[#allocation22_spill]] %s3091_s4  ;;  %p2284_p0 = scmp.ne.s32.totalorder %s3088_s0, %s2283_s29 }
   0x3   :  { %3104 = sst [smem:[#allocation23_spill]] %s3092_s5  ;;  %p2287_p1 = scmp.lt.u32.totalorder %s2283_s29, %s3088_s0 }
   0x4   :  { %3105 = sst [smem:[#allocation24_spill]] %s3093_s6 }
   0x5   :  { %p2289_p2 = pnand %p2287_p1, %p2284_p0 }
   0x7   :  { %2292 = shalt.err (!%p2289_p2)  }
   0x8   :  { %s2531_s12 = smov [#allocation3]   ;;  %s15_s17 = sshll.u32 %s3096_s1, 4  ;;  %s16_s17 = int_to_ptr.vmem [resolvable:$true] %s15_s17 }
   0x9   :  { %14 = dma.hbm_to_smem %s3088_s0, 16, %s2531_s12, [#allocation2] }
   0xa   :  { %s2293_s18 = scalar_lea.vmem %s16_s17, 16  ;;  %p2298_p4 = scmp.lt.s32.totalorder %s16_s17, %s16_s17 }
   0xb   :  { %p2294_p3 = scmp.ne.s32.totalorder %s16_s17, %s2293_s18  ;;  %p2299_p5 = scmp.lt.s32.totalorder %s2293_s18, %s2293_s18 }
   0xd   :  { %p2300_p6 = por %p2299_p5, %p2298_p4 }
   0xf   :  { %p2301_p7 = pnand %p2300_p6, %p2294_p3 }
  0x11   :  { %2304 = shalt.err (!%p2301_p7)  }
  0x12   :  { %s2532_s19 = smov [#allocation4]  }
  0x13   :  { %18 = dma.vmem_to_smem %s16_s17, 16, %s2532_s19, [#allocation2] }
  0x14   :  { %2493 = dma.done.wait [#allocation2], 32 }
  0x15   :  { %2494 = vsyncadd [#allocation2], 4294967264 }
  0x16   :  { %20 = sfence }
  0x17   :  { %21 = vsyncpa [#allocation6], 0 }
  0x18   :  { %23 = vsyncpa [#allocation6 + $0x1], 0 }
  0x19   :  { %24 = vsyncpa [#allocation9], 0 }
  0x1a   :  { %26 = vsyncpa [#allocation9 + $0x1], 0 }
  0x1b   :  { %27 = vsyncpa [#allocation12], 0 }
  0x1c   :  { %28 = vsyncpa [#allocation7], 0 }
  0x1d   :  { %30 = vsyncpa [#allocation7 + $0x1], 0  ;;  %s2605_s0 = smov 0   ;;  %s2607_s1 = smov 0  }
  0x1e   :  { %s2609_s20 = smov 0   ;;  %s2611_s21 = smov 0  }
  0x1f LB: > { %s2626_s22 = sadd.s32 4294967295, %s2529_s21   ;;  %s1833_s23 = sadd.s32 4294967294, %s2529_s21   ;;  %s2529_s21 = sphi %s2611_s21, %s3131_s21   ;;  %s2525_s20 = sphi %s2609_s20, %s3130_s20   ;;  %s2521_s1 = sphi %s2607_s1, %s3129_s1   ;;  %s2517_s0 = sphi %s2605_s0, %s3128_s0  }
  0x20   : > { %p56_p8 = scmp.ne.s32.totalorder %s2521_s1, %s2517_s0  ;;  %p3097_p9 = scmp.eq.s32.totalorder %s2626_s22, 0 }
  0x21   : > { %p196_p11 = scmp.eq.s32.totalorder %s1833_s23, 1  ;;  %p1834_p13 = scmp.ge.s32.totalorder %s2529_s21, 1 }
  0x22   : > { %p2635_p12 = por %p3097_p9, %p56_p8  ;;  %p203_p1 = scmp.lt.s32.totalorder %s2529_s21, 3 }
  0x23   : > { %p2640_p0 = por %p196_p11, %p56_p8  ;;  %s2533_s27 = smov [#allocation10]  }
  0x24   : > { %s3106_s24 = scalar_select %p2635_p12, 1, 0 }
  0x25   : > { %s3107_s25 = scalar_select %p2640_p0, 1, 0 }
  0x26   : > { %p2645_p2 = pnand %p1834_p13, %p203_p1  ;;  %s215_s28 = sshll.u32 %s2533_s27, 4  ;;  %s2649_s28 = int_to_ptr.vmem [resolvable:$true] %s215_s28 }
  0x27   : > { %s2534_s30 = smov [#allocation11]   ;;  %s2535_s10 = smov [#allocation13]  }
  0x28   : > { %s3108_s26 = scalar_select %p2645_p2, 1, 0 }
  0x29   : > { %p2148_p3 = pneg %p2645_p2  ;;  %s228_s9 = sshll.u32 %s2534_s30, 4  ;;  %s2660_s9 = int_to_ptr.vmem [resolvable:$true] %s228_s9 }
  0x2a   : > { %s2662_s11 = sshll.u32 %s2535_s10, 4  ;;  %s3110_s4 = sld [smem:[#allocation22_spill]]  ;;  %s242_s11 = int_to_ptr.vmem [resolvable:$true] %s2662_s11 }
  0x2b   : > { %p2656_p5 = pnand %p2148_p3, %p3097_p9 }
  0x2d   : > { %p2672_p7 = pneg %p2656_p5 }
  0x30   : > { %s2305_s14 = scalar_lea.hbm %s3110_s4, 1024 }
  0x31   : > { %p2306_p6 = scmp.ne.s32.totalorder %s3110_s4, %s2305_s14  ;;  %p2312_p13 = scmp.lt.u32.totalorder %s2305_s14, %s3110_s4 }
  0x33   : > { %p2308_p8 = pnand %p2672_p7, %p2306_p6 }
  0x35   : > { %p2309_p11 = pneg %p2308_p8 }
  0x37   : > { %p2314_p1 = pnand %p2312_p13, %p2309_p11 }
  0x39   : > { %2317 = shalt.err (!%p2314_p1)
}
  0x3a   : > { %s2318_s23 = scalar_lea.vmem %s2649_s28, 1024  ;;  %p2326_p10 = scmp.lt.s32.totalorder %s2649_s28, %s2649_s28 }
  0x3b   : > { %p2319_p3 = scmp.ne.s32.totalorder %s2649_s28, %s2318_s23  ;;  %p2327_p0 = scmp.lt.s32.totalorder %s2318_s23, %s2318_s23 }
  0x3d   : > { %p2321_p4 = pnand %p2319_p3, %p2672_p7  ;;  %p2328_p6 = por %p2327_p0, %p2326_p10 }
  0x3f   : > { %p2322_p9 = pneg %p2321_p4 }
  0x41   : > { %p2329_p8 = pnand %p2328_p6, %p2322_p9 }
  0x43   : > { %2332 = shalt.err (!%p2329_p8)
}
  0x44   : > { %s3100_s27 = smov 64   ;;  %s2537_s30 = smov 4  }
  0x45   : > { %2151 = dma.hbm_to_vmem [thread:$0]  (!%p2656_p5), %s3110_s4, 1024, %s2649_s28, [#allocation9], %s3100_s27, %s3100_s27, %s2537_s30  }
  0x46   : > { %s3112_s5 = sld [smem:[#allocation23_spill]] }
  0x4c   : > { %s2333_s15 = scalar_lea.hbm %s3112_s5, 1024 }
  0x4d   : > { %p2334_p9 = scmp.ne.s32.totalorder %s3112_s5, %s2333_s15  ;;  %p2340_p4 = scmp.lt.u32.totalorder %s2333_s15, %s3112_s5 }
  0x4f   : > { %p2336_p10 = pnand %p2334_p9, %p2672_p7 }
  0x51   : > { %p2337_p0 = pneg %p2336_p10 }
  0x53   : > { %p2342_p11 = pnand %p2340_p4, %p2337_p0 }
  0x55   : > { %2345 = shalt.err (!%p2342_p11)
}
  0x56   : > { %s2346_s28 = scalar_lea.vmem %s2660_s9, 1024  ;;  %p2354_p6 = scmp.lt.s32.totalorder %s2660_s9, %s2660_s9 }
  0x57   : > { %p2347_p13 = scmp.ne.s32.totalorder %s2660_s9, %s2346_s28  ;;  %p2355_p8 = scmp.lt.s32.totalorder %s2346_s28, %s2346_s28 }
  0x59   : > { %p2349_p1 = pnand %p2347_p13, %p2672_p7  ;;  %p2356_p9 = por %p2355_p8, %p2354_p6 }
  0x5b   : > { %p2350_p3 = pneg %p2349_p1 }
  0x5d   : > { %p2357_p10 = pnand %p2356_p9, %p2350_p3 }
  0x5f   : > { %2360 = shalt.err (!%p2357_p10)
}
  0x60   : > { %2154 = dma.hbm_to_vmem [thread:$0]  (!%p2656_p5), %s3112_s5, 1024, %s2660_s9, [#allocation12], %s3100_s27, %s3100_s27, %s2537_s30  }
  0x61   : > { %s3113_s6 = sld [smem:[#allocation24_spill]] }
  0x67   : > { %s2361_s15 = scalar_lea.hbm %s3113_s6, 1024 }
  0x68   : > { %p2362_p0 = scmp.ne.s32.totalorder %s3113_s6, %s2361_s15  ;;  %p2368_p13 = scmp.lt.u32.totalorder %s2361_s15, %s3113_s6 }
  0x6a   : > { %p2364_p4 = pnand %p2362_p0, %p2672_p7 }
  0x6c   : > { %p2365_p11 = pneg %p2364_p4 }
  0x6e   : > { %p2370_p1 = pnand %p2368_p13, %p2365_p11 }
  0x70   : > { %2373 = shalt.err (!%p2370_p1)
}
  0x71   : > { %s2374_s28 = scalar_lea.vmem %s242_s11, 1024  ;;  %p2382_p9 = scmp.lt.s32.totalorder %s242_s11, %s242_s11 }
  0x72   : > { %p2375_p3 = scmp.ne.s32.totalorder %s242_s11, %s2374_s28  ;;  %p2383_p10 = scmp.lt.s32.totalorder %s2374_s28, %s2374_s28 }
  0x74   : > { %p2377_p6 = pnand %p2375_p3, %p2672_p7  ;;  %p2384_p12 = por %p2383_p10, %p2382_p9 }
  0x76   : > { %p2378_p8 = pneg %p2377_p6 }
  0x78   : > { %p2385_p2 = pnand %p2384_p12, %p2378_p8 }
  0x7a   : > { %2388 = shalt.err (!%p2385_p2)
}
  0x7b   : > { %2157 = dma.hbm_to_vmem [thread:$0]  (!%p2656_p5), %s3113_s6, 1024, %s242_s11, [#allocation12], %s3100_s27, %s3100_s27, %s2537_s30  }
  0x7c   : > { %s2745_s17 = sadd.s32 1, %s2529_s21   ;;  %s43_s12 = sadd.s32 1, %s2525_s20 }
  0x7d   : > { %s40_s29 = ssub.s32 %s2529_s21, %s2745_s17  ;;  %p50_p2 = scmp.ne.s32.totalorder %s2525_s20, %s2521_s1 }
  0x7e   : > { %p41_p12 = scmp.eq.s32.totalorder %s40_s29, 0  ;;  %p51_p7 = scmp.eq.s32.totalorder %s2529_s21, 0 }
  0x7f   : > { %p2172_p0 = scmp.lt.s32.totalorder %s2529_s21, 2  ;;  %p3114_p11 = scmp.eq.s32.totalorder %s2626_s22, 1 }
  0x80   : > { %s2755_s13 = scalar_select %p41_p12, %s2525_s20, %s43_s12  }
  0x81   : > { %p52_p4 = por %p51_p7, %p50_p2  ;;  %p2759_p13 = por %p3114_p11, %p50_p2 }
  0x82   : > { %s2764_s15 = sand.u32 1, %s2525_s20   ;;  %s1901_s11 = sshll.u32 %s2529_s21, 8 }
  0x83   : > { %s1839_s16 = sshll.u32 %s2764_s15, 4  ;;  %s3116_s2 = sld [smem:[#allocation21_spill]] }
  0x84   : > { %s262_s28 = scalar_lea.vmem [#allocation5], %s1839_s16  ;;  %p2773_p5 = pnand %p2172_p0, %p52_p4 }
  0x85   : > { %s269_s9 = sshll.u32 %s262_s28, 4  ;;  %s259_s12 = scalar_lea.sflag [#allocation6], %s2764_s15  ;;  %s2777_s9 = int_to_ptr.vmem [resolvable:$true] %s269_s9 }
  0x86   : > { %p2391_p3 = pneg %p2773_p5 }
  0x89   : > { %s2771_s23 = scalar_lea.hbm %s3116_s2, %s1901_s11  ;;  %s2394_s18 = scalar_lea.hbm %s3116_s2, 512 }
  0x8a   : > { %s2389_s27 = scalar_lea.hbm %s2771_s23, 256  ;;  %p2395_p9 = scmp.lt.u32.totalorder %s2771_s23, %s3116_s2 }
  0x8b   : > { %p2390_p1 = scmp.ne.s32.totalorder %s2771_s23, %s2389_s27  ;;  %p2396_p10 = scmp.lt.u32.totalorder %s2394_s18, %s2389_s27 }
  0x8c   : > { %p2398_p2 = scmp.lt.u32.totalorder %s2389_s27, %s2771_s23 }
  0x8d   : > { %p2392_p6 = pnand %p2391_p3, %p2390_p1  ;;  %p2397_p12 = por %p2396_p10, %p2395_p9 }
  0x8f   : > { %p2393_p8 = pneg %p2392_p6  ;;  %p2399_p7 = por %p2398_p2, %p2397_p12 }
  0x91   : > { %p2400_p0 = pnand %p2399_p7, %p2393_p8 }
  0x93   : > { %2403 = shalt.err (!%p2400_p0)
}
  0x94   : > { %s2404_s29 = scalar_lea.vmem %s2777_s9, 256  ;;  %s2538_s11 = smov [#allocation5]  }
  0x95   : > { %p2405_p4 = scmp.ne.s32.totalorder %s2777_s9, %s2404_s29  ;;  %s2409_s16 = sshll.u32 %s2538_s11, 4  ;;  %s2410_s16 = int_to_ptr.vmem [resolvable:$false] %s2409_s16 }
  0x96   : > { %s2411_s19 = scalar_lea.vmem %s2410_s16, 512  ;;  %p2412_p6 = scmp.lt.s32.totalorder %s2777_s9, %s2410_s16 }
  0x97   : > { %p2407_p11 = pnand %p2405_p4, %p2391_p3  ;;  %p2413_p9 = scmp.lt.s32.totalorder %s2411_s19, %s2404_s29 }
  0x99   : > { %p2408_p1 = pneg %p2407_p11  ;;  %p2414_p10 = por %p2413_p9, %p2412_p6 }
  0x9b   : > { %p2415_p12 = pnand %p2414_p10, %p2408_p1 }
  0x9d   : > { %2418 = shalt.err (!%p2415_p12)
}
  0x9e   : > { %s3118_s27 = smov 64   ;;  %s1842_s18 = sshll.u32 %s2764_s15, 5 }
  0x9f   : > { %2161 = dma.hbm_to_vmem [thread:$0]  (!%p2773_p5), %s2771_s23, 256, %s2777_s9, %s259_s12, %s3118_s27, %s3118_s27, %s2537_s30  }
  0xa0   : > { %s1902_s28 = sshll.u32 %s2529_s21, 9  ;;  %s283_s19 = scalar_lea.vmem [#allocation8], %s1842_s18 }
  0xa1   : > { %s2816_s16 = scalar_lea.hbm %s3090_s3, %s1902_s28  ;;  %s290_s2 = sshll.u32 %s283_s19, 4  ;;  %s2818_s2 = int_to_ptr.vmem [resolvable:$true] %s290_s2 }
  0xa2   : > { %s3119_s4 = sand.u32 1, %s2529_s21   ;;  %s2419_s6 = scalar_lea.hbm %s2816_s16, 512 }
  0xa3   : > { %s2822_s5 = scalar_lea.sflag [#allocation9], %s3119_s4  ;;  %p2420_p8 = scmp.ne.s32.totalorder %s2816_s16, %s2419_s6 }
  0xa4   : > { %s2424_s9 = scalar_lea.hbm %s3090_s3, 1024  ;;  %p2425_p0 = scmp.lt.u32.totalorder %s2816_s16, %s3090_s3 }
  0xa5   : > { %p2422_p2 = pnand %p2420_p8, %p2391_p3  ;;  %p2426_p4 = scmp.lt.u32.totalorder %s2424_s9, %s2419_s6 }
  0xa6   : > { %p2428_p1 = scmp.lt.u32.totalorder %s2419_s6, %s2816_s16 }
  0xa7   : > { %p2423_p7 = pneg %p2422_p2  ;;  %p2427_p11 = por %p2426_p4, %p2425_p0 }
  0xa9   : > { %p2429_p6 = por %p2428_p1, %p2427_p11 }
  0xab   : > { %p2430_p9 = pnand %p2429_p6, %p2423_p7 }
  0xad   : > { %2433 = shalt.err (!%p2430_p9)
}
  0xae   : > { %s2434_s4 = scalar_lea.vmem %s2818_s2, 512  ;;  %s2539_s18 = smov [#allocation8]  }
  0xaf   : > { %p2435_p10 = scmp.ne.s32.totalorder %s2818_s2, %s2434_s4  ;;  %s2439_s29 = sshll.u32 %s2539_s18, 4  ;;  %s2440_s29 = int_to_ptr.vmem [resolvable:$false] %s2439_s29 }
  0xb0   : > { %s2441_s11 = scalar_lea.vmem %s2440_s29, 1024  ;;  %p2442_p2 = scmp.lt.s32.totalorder %s2818_s2, %s2440_s29 }
  0xb1   : > { %p2437_p12 = pnand %p2435_p10, %p2391_p3  ;;  %p2443_p0 = scmp.lt.s32.totalorder %s2441_s11, %s2434_s4 }
  0xb3   : > { %p2438_p8 = pneg %p2437_p12  ;;  %p2444_p4 = por %p2443_p0, %p2442_p2 }
  0xb5   : > { %p2445_p11 = pnand %p2444_p4, %p2438_p8 }
  0xb7   : > { %2448 = shalt.err (!%p2445_p11)
}
  0xb8   : > { %2164 = dma.hbm_to_vmem [thread:$0]  (!%p2773_p5), %s2816_s16, 512, %s2818_s2, %s2822_s5, %s3118_s27, %s3118_s27, %s2537_s30  }
  0xb9   : > { %p3120_p3 = scmp.ne.s32.totalorder %s3108_s26, 0 }
  0xba   : > { %s2854_s6 = sand.u32 (!%p3120_p3), 1, %s2521_s1   ;;  %p3121_p7 = scmp.ne.s32.totalorder (!%p3120_p3), %s3106_s24, 0 }
  0xbb   : > { %302 = sbr.rel (%p3120_p3) target bundleno = 2334 (0x91e), region = 44  ;;  %s1846_s19 = sshll.u32 (!%p3120_p3), %s2854_s6, 4 }
  0xbc   : > { %s305_s15 = scalar_lea.sflag (!%p3120_p3), [#allocation6], %s2854_s6  ;;  %s2858_s23 = scalar_lea.vmem (!%p3120_p3), [#allocation5], %s1846_s19 }
  0xc2   : > { %2496 = dma.done.wait (%p3121_p7), %s305_s15, 256  }
  0xc3   : > { %2498 = vsyncadd (%p3121_p7), %s305_s15, 4294967040  ;;  %s313_s2 = sand.u32 1, %s2626_s22   ;;  %s1847_s5 = sshll.u32 %s2854_s6, 5 }
  0xc4   : > { %s314_s26 = scalar_lea.sflag [#allocation9], %s313_s2  ;;  %s2868_s30 = scalar_lea.vmem [#allocation8], %s1847_s5 }
  0xc5   : > { %2500 = dma.done.wait (%p3121_p7), %s314_s26, 512  }
  0xc6   : > { %2502 = vsyncadd (%p3121_p7), %s314_s26, 4294966784  ;;  %p3122_p5 = scmp.eq.s32.totalorder %s2626_s22, 0 }
  0xc8   : > { %2504 = dma.done.wait (%p3122_p5), [#allocation9], 1024   ;;  %p3123_p1 = pmov %p3122_p5 }
  0xca   : > { %2506 = vsyncadd (%p3123_p1), [#allocation9], 4294966272  ;;  %p3124_p6 = pmov %p3123_p1 }
  0xcb   : > { %p3125_p9 = pmov %p3123_p1 }
  0xcc   : > { %2508 = dma.done.wait (%p3124_p6), [#allocation12], 2048  }
  0xcd   : > { %2510 = vsyncadd (%p3125_p9), [#allocation12], 4294965248  ;;  %v2540_v0 = vmov 0.0   ;;  %vm2541_vm0 = vmmov 0   ;;  %v2889_v1 = vld [vmem:[%s2868_s30] sm:$0xff]   ;;  %vm480_vm1 = vcmask 1043456   ;;  %v419_v6 = vlaneseq }
  0xce   : > { %1966 = vmatprep.subr.bf16.mxu0 %v2540_v0  ;;  %1990 = vmatprep.subr.bf16.mxu1 %v2540_v0  ;;  %v2222_v2 = vld [vmem:[%s2868_s30 + $0x8] sm:$0xff]   ;;  %v368_v3 = vld [vmem:[%s2858_s23] sm:$0xf]  ;;  %v2898_v5 = vld [vmem:[%s2858_s23 + $0x4] sm:$0xf]  ;;  %s2908_s24 = sshll.u32 %s2626_s22, 2 }
  0xcf   : > { %1968 = vmatprep.mubr.msk.bf16.mxu0 %vm2541_vm0, %v2540_v0  ;;  %1992 = vmatprep.mubr.msk.bf16.mxu1 %vm2541_vm0, %v2540_v0  ;;  %v482_v4 = vsel %vm480_vm1, %v368_v3, 0  ;;  %s613_s10 = sadd.s32 1, %s2908_s24  ;;  %s371_s27 = sld [smem:[#allocation3 + %s2908_s24]]  ;;  %v2913_v7 = vshrl.u32 %v419_v6, 7  ;;  %v2915_v8 = vand.u32 127, %v419_v6  ;;  %vm429_vm7 = vcmask 130048  }
  0xd0   : > { %1967 = vmatpush3.bf16.xpose.msra.mxu0 %v2889_v1  ;;  %1991 = vmatpush3.bf16.xpose.msra.mxu1 %v2222_v2  ;;  %s372_s16 = sld [smem:[#allocation4 + %s2908_s24]]  ;;  %vm476_vm9 = vcmask 64512   ;;  %s849_s28 = sadd.s32 2, %s2908_s24 }
  0xd1   : > { %1972 = vmatprep.subr.bf16.mxu0 %v2540_v0  ;;  %2002 = vmatprep.subr.bf16.mxu1 %v2540_v0  ;;  %s614_s9 = sld [smem:[#allocation3 + %s613_s10]]  ;;  %s1085_s29 = sadd.s32 3, %s2908_s24 }
  0xd2   : > { %s615_s12 = sld [smem:[#allocation4 + %s613_s10]]  ;;  %s362_s2 = scalar_lea.vmem [#allocation14], %s1847_s5 }
  0xd3   : > { %s850_s4 = sld [smem:[#allocation3 + %s849_s28]]  ;;  %s1709_s26 = sshll.u32 %s362_s2, 4  ;;  %s3039_s26 = int_to_ptr.vmem [resolvable:$true] %s1709_s26 }
  0xd4   : > { %s851_s18 = sld [smem:[#allocation4 + %s849_s28]] }
  0xd5   : > { %v423_v9 = vstv %s371_s27  ;;  %s1086_s11 = sld [smem:[#allocation3 + %s1085_s29]]  ;;  %s2449_s27 = scalar_lea.vmem %s3039_s26, 512 }
  0xd6   : > { %v425_v10 = vstv %s372_s16  ;;  %vm424_vm2 = vcmp.lt.s32.totalorder %v2913_v7, %v423_v9  ;;  %s1087_s19 = sld [smem:[#allocation4 + %s1085_s29]]  ;;  %p2450_p10 = scmp.ne.s32.totalorder %s3039_s26, %s2449_s27 }
  0xd7   : > { %1969 = vmatmul.mubr.bf16.vlgmr.msra.gmra.mrb[0].mxu0 %v368_v3  ;;  %1993 = vmatmul.mubr.bf16.vlgmr.msra.gmra.mrb[0].mxu1 %v2898_v5  ;;  %v662_v11 = vstv %s614_s9  ;;  %vm426_vm3 = vcmp.lt.s32.totalorder %v2915_v8, %v425_v10  ;;  %s2542_s16 = smov [#allocation14]  }
  0xd8   : > { %1973 = vmatpush3.bf16.msra.mxu0 %v482_v4  ;;  %1974 = vmatprep.mubr.msk.bf16.mxu0 %vm2541_vm0, %v2540_v0  ;;  %v664_v12 = vstv %s615_s12  ;;  %vm663_vm4 = vcmp.lt.s32.totalorder %v2913_v7, %v662_v11  ;;  %vm427_vm6 = vmand %vm424_vm2, %vm426_vm3  ;;  %p2451_p12 = pnand %p2450_p10, %p2759_p13  ;;  %s2453_s9 = sshll.u32 %s2542_s16, 4  ;;  %s2454_s9 = int_to_ptr.vmem [resolvable:$false] %s2453_s9 }
  0xd9   : > { %2003 = vmatpush3.bf16.msra.mxu1 %v2222_v2  ;;  %2004 = vmatprep.mubr.msk.bf16.mxu1 %vm2541_vm0, %v2540_v0  ;;  %vm665_vm5 = vcmp.lt.s32.totalorder %v2915_v8, %v664_v12  ;;  %s2455_s12 = scalar_lea.vmem %s2454_s9, 1024  ;;  %p2456_p2 = scmp.lt.s32.totalorder %s3039_s26, %s2454_s9 }
  0xda   : > { %2014 = vmatprep.subr.bf16.mxu1 %v2540_v0  ;;  %1978 = vmatprep.subr.bf16.mxu0 %v2540_v0  ;;  %vm666_vm8 = vmand %vm663_vm4, %vm665_vm5  ;;  %p2452_p8 = pneg %p2451_p12  ;;  %p2457_p0 = scmp.lt.s32.totalorder %s2455_s12, %s2449_s27 }
  0xdc   : > { %p2458_p4 = por %p2457_p0, %p2456_p2 }
  0xde   : > { %p2459_p11 = pnand %p2458_p4, %p2452_p8 }
 0x1aa   : > { %v413_v13 = vpop.f32.mrb[0].mxu0  ;;  %v656_v15 = vpop.f32.mrb[0].mxu1 }
 0x1ab   : > { %v428_v14 = vsel %vm427_vm6, %v413_v13, -1e+10  ;;  %v1970_v16 = vpop.f32.mrb[1].mxu0  ;;  %v667_v18 = vsel %vm666_vm8, %v656_v15, -1e+10  ;;  %v1994_v19 = vpop.f32.mrb[1].mxu1 }
 0x1ac   : > { %v430_v17 = vsel %vm429_vm7, %v428_v14, -inf  ;;  %v416_v20 = vpop.f32.mrb[2].mxu0  ;;  %v659_v22 = vpop.f32.mrb[2].mxu1  ;;  %v668_v23 = vsel %vm429_vm7, %v667_v18, -inf  ;;  %v2941_v19 = vld [vmem:[%s2858_s23 + $0x8] sm:$0xf] }
 0x1ad   : > { %v441_v21 = vrot.slane %v430_v17, 4  ;;  %v1971_v24 = vpop.f32.mrb[3].mxu0  ;;  %669 = vmax.xlane.f32.xlu0 %v668_v23  ;;  %v1995_v25 = vpop.f32.mrb[3].mxu1  ;;  %v679_v50 = vrot.slane %v668_v23, 4 }
 0x1af   : > { %v442_v26 = vmax.f32 %v430_v17, %v441_v21  ;;  %v680_v51 = vmax.f32 %v668_v23, %v679_v50 }
 0x1b1   : > { %v443_v27 = vrot.slane %v442_v26, 2  ;;  %v681_v52 = vrot.slane %v680_v51, 2 }
 0x1b3   : > { %v444_v28 = vmax.f32 %v442_v26, %v443_v27  ;;  %v682_v53 = vmax.f32 %v680_v51, %v681_v52 }
 0x1b5   : > { %v445_v29 = vrot.slane %v444_v28, 1  ;;  %v683_v54 = vrot.slane %v682_v53, 1 }
 0x1b7   : > { %v446_v30 = vmax.f32 %v444_v28, %v445_v29  ;;  %v684_v55 = vmax.f32 %v682_v53, %v683_v54  ;;  %v718_v29 = vsel %vm480_vm1, %v2898_v5, 0  ;;  %v898_v5 = vstv %s850_s4 }
 0x1b8   : > { %vm899_vm10 = vcmp.lt.s32.totalorder %v2913_v7, %v898_v5 }
 0x1b9   : > { %v447_v31 = vsub.f32 %v428_v14, %v446_v30  ;;  %v685_v56 = vsub.f32 %v667_v18, %v684_v55 }
 0x1bb   : > { %v448_v32 = vmul.f32 1.442695, %v447_v31  ;;  %v686_v57 = vmul.f32 1.442695, %v685_v56 }
 0x1bd   : > { %2251 = vpow2.f32 %v448_v32  ;;  %v900_v32 = vstv %s851_s18 }
 0x1be   : > { %vm901_vm11 = vcmp.lt.s32.totalorder %v2915_v8, %v900_v32  ;;  %v2995_v32 = vld [vmem:[%s2858_s23 + $0xc] sm:$0xf] }
 0x1bf   : > { %vm902_vm12 = vmand %vm899_vm10, %vm901_vm11 }
 0x1c7   : > { %v2252_v33 = vpop.eup %2251 }
 0x1c8   : > { %v450_v34 = vsel %vm429_vm7, %v2252_v33, 0.0 }
 0x1c9   : > { %v451_v35 = vrot.slane %v450_v34, 4 }
 0x1cb   : > { %v452_v36 = vadd.f32 %v451_v35, %v450_v34 }
 0x1cd   : > { %v453_v37 = vrot.slane %v452_v36, 2 }
 0x1cf   : > { %v454_v38 = vadd.f32 %v453_v37, %v452_v36 }
 0x1d1   : > { %v455_v39 = vrot.slane %v454_v38, 1 }
 0x1d3   : > { %v456_v40 = vadd.f32 %v455_v39, %v454_v38 }
 0x1d5   : > { %2253 = vrcp.f32 %v456_v40 }
 0x1df   : > { %v2254_v41 = vpop.eup %2253 }
 0x1e0   : > { %v458_v42 = vmul.f32 %v2254_v41, %v2252_v33 }
 0x1e2   : > { %v459_v43 = vpack.c.bf16 %v458_v42, %v458_v42 }
 0x1e4   : > { %460 = vxpose.xlu1.c.b16.start.end [1/1] (short) (narrow) %v459_v43, 16 }
 0x1f1   : > { %431 = vmax.xlane.f32.xlu1 %v430_v17  ;;  %v2223_v17 = vld [vmem:[%s2868_s30 + $0x10] sm:$0xff]  }
 0x23a   : > { %v670_v44 = vpop.xlane.xlu0 %669 }
 0x23b   : > { %v671_v45 = vsub.f32 %v667_v18, %v670_v44 }
 0x23d   : > { %v672_v46 = vmul.f32 1.442695, %v671_v45 }
 0x23f   : > { %2255 = vpow2.f32 %v672_v46 }
 0x240   : > { %2257 = vpow2.f32 %v686_v57 }
 0x249   : > { %v2256_v47 = vpop.eup %2255 }
 0x24a   : > { %v468_v48 = vpop.trf.xlu1  ;;  %v674_v49 = vsel %vm429_vm7, %v2256_v47, 0.0  ;;  %v2258_v61 = vpop.eup %2257 }
 0x24b   : > { %1975 = vmatmul.mubr.msk.bf16.vlgmr.msra.gmra.mrb[4].mxu0 %vm476_vm9, %v468_v48  ;;  %675 = vadd.xlane.f32.xlu0 %v674_v49 }
 0x24c   : > { %1979 = vmatpush3.bf16.msra.mxu0 %v2889_v1  ;;  %1980 = vmatprep.mubr.msk.bf16.mxu0 %vm2541_vm0, %v2540_v0  ;;  %v688_v1 = vsel %vm429_vm7, %v2258_v61, 0.0 }
 0x24d   : > { %1984 = vmatprep.subr.bf16.mxu0 %v2540_v0  ;;  %v689_v2 = vrot.slane %v688_v1, 4 }
 0x24f   : > { %v690_v3 = vadd.f32 %v689_v2, %v688_v1 }
 0x251   : > { %v691_v4 = vrot.slane %v690_v3, 2 }
 0x253   : > { %v692_v6 = vadd.f32 %v691_v4, %v690_v3 }
 0x255   : > { %v693_v9 = vrot.slane %v692_v6, 1 }
 0x257   : > { %v694_v10 = vadd.f32 %v693_v9, %v692_v6 }
 0x27e   : > { %v432_v58 = vpop.xlane.xlu1 %431 }
 0x27f   : > { %v433_v59 = vsub.f32 %v428_v14, %v432_v58 }
 0x281   : > { %v434_v60 = vmul.f32 1.442695, %v433_v59 }
 0x283   : > { %2259 = vpow2.f32 %v434_v60 }
 0x284   : > { %2261 = vrcp.f32 %v694_v10 }
 0x28d   : > { %v2260_v62 = vpop.eup %2259 }
 0x28e   : > { %v436_v63 = vsel %vm429_vm7, %v2260_v62, 0.0  ;;  %v2262_v11 = vpop.eup %2261 }
 0x28f   : > { %437 = vadd.xlane.f32.xlu0 %v436_v63  ;;  %v696_v12 = vmul.f32 %v2262_v11, %v2258_v61 }
 0x291   : > { %v697_v13 = vpack.c.bf16 %v696_v12, %v696_v12 }
 0x2bc   : > { %698 = vxpose.xlu0.c.b16.start.end [1/1] (short) (narrow) %v697_v13, 16 }
 0x2d8   : > { %v676_v14 = vpop.xlane.xlu0 %675 }
 0x2d9   : > { %2263 = vrcp.f32 %v676_v14 }
 0x2e3   : > { %v2264_v15 = vpop.eup %2263 }
 0x2e4   : > { %v678_v16 = vmul.f32 %v2264_v15, %v2256_v47  ;;  %v954_v15 = vsel %vm480_vm1, %v2941_v19, 0 }
 0x2e6   : > { %v2933_v18 = vpack.c.bf16 %v678_v16, %v678_v16 }
 0x2e8   : > { %2005 = vmatmul.mubr.msk.bf16.vlgmr.msra.gmra.mrb[4].mxu1 %vm429_vm7, %v2933_v18 }
 0x2e9   : > { %2015 = vmatpush3.bf16.xpose.msra.mxu1 %v2223_v17  ;;  %2016 = vmatprep.mubr.msk.bf16.mxu1 %vm2541_vm0, %v2540_v0 }
 0x2ea   : > { %2026 = vmatprep.subr.bf16.mxu1 %v2540_v0 }
 0x2f0   : > { %2017 = vmatmul.mubr.bf16.vlgmr.msra.gmra.mrb[8].mxu1 %v2941_v19 }
 0x2f1   : > { %2027 = vmatpush3.bf16.msra.mxu1 %v2223_v17  ;;  %2028 = vmatprep.mubr.msk.bf16.mxu1 %vm2541_vm0, %v2540_v0 }
 0x2f2   : > { %2038 = vmatprep.subr.bf16.mxu1 %v2540_v0 }
 0x31c   : > { %v438_v20 = vpop.xlane.xlu0 %437 }
 0x31d   : > { %2265 = vrcp.f32 %v438_v20 }
 0x31e   : > { %v518_v21 = vpop.f32.mrb[4].mxu0 }
 0x31f   : > { %v1976_v22 = vpop.f32.mrb[5].mxu0 }
 0x320   : > { %v521_v23 = vpop.f32.mrb[6].mxu0 }
 0x321   : > { %v569_v24 = vpack.c.bf16 %v521_v23, %v518_v21  ;;  %v1977_v25 = vpop.f32.mrb[7].mxu0 }
 0x322   : > { %v706_v30 = vpop.trf.xlu0 }
 0x327   : > { %v2266_v26 = vpop.eup %2265 }
 0x328   : > { %v440_v27 = vmul.f32 %v2266_v26, %v2260_v62 }
 0x32a   : > { %v525_v28 = vpack.c.bf16 %v440_v27, %v440_v27 }
 0x32c   : > { %1981 = vmatmul.mubr.msk.bf16.vlgmr.msra.gmra.mrb[8].mxu0 %vm429_vm7, %v525_v28 }
 0x32d   : > { %1985 = vmatpush3.bf16.msra.mxu0 %v569_v24  ;;  %1986 = vmatprep.mubr.msk.bf16.mxu0 %vm2541_vm0, %v2540_v0 }
 0x32e   : > { %1996 = vmatprep.subr.bf16.mxu0 %v2540_v0 }
 0x334   : > { %1987 = vmatmul.mubr.msk.bf16.vlgmr.msra.gmra.mrb[12].mxu0 %vm429_vm7, %v525_v28 }
 0x335   : > { %1997 = vmatpush3.bf16.msra.mxu0 %v718_v29  ;;  %1998 = vmatprep.mubr.msk.bf16.mxu0 %vm2541_vm0, %v2540_v0 }
 0x336   : > { %2008 = vmatprep.subr.bf16.mxu0 %v2540_v0 }
 0x33c   : > { %1999 = vmatmul.mubr.msk.bf16.vlgmr.msra.gmra.mrb[16].mxu0 %vm476_vm9, %v706_v30  ;;  %v2224_v30 = vld [vmem:[%s2868_s30 + $0x18] sm:$0xff]   ;;  %s1903_s30 = sshll.u32 %s2626_s22, 9  ;;  %s1696_s22 = scalar_lea.sflag [#allocation7], %s2854_s6 }
 0x33d   : > { %2010 = vmatprep.mubr.msk.bf16.mxu0 %vm2541_vm0, %v2540_v0  ;;  %s3044_s10 = scalar_lea.hbm %s3095_s8, %s1903_s30 }
 0x3bb   : > { %v2961_v31 = vpop.f32.mrb[4].mxu1 }
 0x3bc   : > { %v2006_v33 = vpop.f32.mrb[5].mxu1 }
 0x3bd   : > { %v802_v34 = vpop.f32.mrb[6].mxu1 }
 0x3be   : > { %v2007_v35 = vpop.f32.mrb[7].mxu1 }
 0x3c3   : > { %v892_v36 = vpop.f32.mrb[8].mxu1 }
 0x3c4   : > { %v903_v37 = vsel %vm902_vm12, %v892_v36, -1e+10  ;;  %v2018_v38 = vpop.f32.mrb[9].mxu1 }
 0x3c5   : > { %v895_v39 = vpop.f32.mrb[10].mxu1  ;;  %v904_v40 = vsel %vm429_vm7, %v903_v37, -inf  ;;  %v1190_v38 = vsel %vm480_vm1, %v2995_v32, 0 }
 0x3c6   : > { %v2019_v41 = vpop.f32.mrb[11].mxu1  ;;  %905 = vmax.xlane.f32.xlu1 %v904_v40  ;;  %v915_v56 = vrot.slane %v904_v40, 4 }
 0x3c7   : > { %v1136_v41 = vstv %s1087_s19 }
 0x3c8   : > { %v916_v57 = vmax.f32 %v904_v40, %v915_v56  ;;  %v1134_v40 = vstv %s1086_s11  ;;  %vm1137_vm14 = vcmp.lt.s32.totalorder %v2915_v8, %v1136_v41  ;;  %v2241_v41 = vld [vmem:[#allocation11 + $0x18] sm:$0xff]  }
 0x3c9   : > { %vm1135_vm13 = vcmp.lt.s32.totalorder %v2913_v7, %v1134_v40  ;;  %v2229_v40 = vld [vmem:[#allocation10 + $0x18] sm:$0xff]  }
 0x3ca   : > { %v917_v58 = vrot.slane %v916_v57, 2  ;;  %vm1138_vm15 = vmand %vm1135_vm13, %vm1137_vm14 }
 0x3cc   : > { %v918_v59 = vmax.f32 %v916_v57, %v917_v58 }
 0x3ce   : > { %v919_v60 = vrot.slane %v918_v59, 1 }
 0x3d0   : > { %v920_v61 = vmax.f32 %v918_v59, %v919_v60 }
 0x3d2   : > { %v921_v62 = vsub.f32 %v903_v37, %v920_v61 }
 0x3d4   : > { %v922_v63 = vmul.f32 1.442695, %v921_v62 }
 0x3d6   : > { %2267 = vpow2.f32 %v922_v63 }
 0x3e0   : > { %v2268_v4 = vpop.eup %2267 }
 0x3e1   : > { %v924_v10 = vsel %vm429_vm7, %v2268_v4, 0.0 }
 0x3e2   : > { %v925_v11 = vrot.slane %v924_v10, 4 }
 0x3e4   : > { %v926_v12 = vadd.f32 %v925_v11, %v924_v10 }
 0x3e6   : > { %v927_v13 = vrot.slane %v926_v12, 2 }
 0x3e8   : > { %v928_v14 = vadd.f32 %v927_v13, %v926_v12 }
 0x3ea   : > { %v929_v16 = vrot.slane %v928_v14, 1 }
 0x3ec   : > { %v930_v17 = vadd.f32 %v929_v16, %v928_v14 }
 0x3ff   : > { %v2966_v42 = vpop.f32.mrb[8].mxu0 }
 0x400   : > { %v1321_v43 = vpack.c.bf16 %v2961_v31, %v2966_v42  ;;  %v1982_v44 = vpop.f32.mrb[9].mxu0  ;;  %v2231_v31 = vld [vmem:[#allocation10 + $0x28] sm:$0xff]  }
 0x401   : > { %v566_v45 = vpop.f32.mrb[10].mxu0  ;;  %v2245_v42 = vld [vmem:[#allocation11 + $0x28] sm:$0xff]  }
 0x402   : > { %v1983_v46 = vpop.f32.mrb[11].mxu0 }
 0x407   : > { %v2970_v47 = vpop.f32.mrb[12].mxu0 }
 0x408   : > { %v1988_v48 = vpop.f32.mrb[13].mxu0 }
 0x409   : > { %v607_v49 = vpop.f32.mrb[14].mxu0 }
 0x40a   : > { %v1989_v50 = vpop.f32.mrb[15].mxu0 }
 0x40f   : > { %v754_v51 = vpop.f32.mrb[16].mxu0 }
 0x410   : > { %v2000_v52 = vpop.f32.mrb[17].mxu0 }
 0x411   : > { %v757_v53 = vpop.f32.mrb[18].mxu0 }
 0x412   : > { %v805_v54 = vpack.c.bf16 %v757_v53, %v754_v51  ;;  %v2001_v55 = vpop.f32.mrb[19].mxu0 }
 0x414   : > { %2009 = vmatpush3.bf16.msra.mxu0 %v805_v54 }
 0x415   : > { %2020 = vmatprep.subr.bf16.mxu0 %v2540_v0 }
 0x417   : > { %2011 = vmatmul.mubr.msk.bf16.vlgmr.msra.gmra.mrb[20].mxu0 %vm429_vm7, %v2933_v18 }
 0x418   : > { %2022 = vmatprep.mubr.msk.bf16.mxu0 %vm2541_vm0, %v2540_v0  ;;  %2021 = vmatpush3.bf16.msra.mxu0 %v954_v15 }
 0x419   : > { %2032 = vmatprep.subr.bf16.mxu0 %v2540_v0 }
 0x453   : > { %v906_v1 = vpop.xlane.xlu1 %905 }
 0x454   : > { %v907_v2 = vsub.f32 %v903_v37, %v906_v1 }
 0x456   : > { %v908_v3 = vmul.f32 1.442695, %v907_v2 }
 0x458   : > { %2269 = vpow2.f32 %v908_v3 }
 0x459   : > { %2271 = vrcp.f32 %v930_v17 }
 0x462   : > { %v2270_v6 = vpop.eup %2269 }
 0x463   : > { %v910_v9 = vsel %vm429_vm7, %v2270_v6, 0.0  ;;  %v2272_v18 = vpop.eup %2271 }
 0x464   : > { %911 = vadd.xlane.f32.xlu1 %v910_v9  ;;  %v932_v20 = vmul.f32 %v2272_v18, %v2268_v4 }
 0x466   : > { %v933_v21 = vpack.c.bf16 %v932_v20, %v932_v20 }
 0x491   : > { %934 = vxpose.xlu1.c.b16.start.end [1/1] (short) (narrow) %v933_v21, 16 }
 0x4ea   : > { %v2982_v22 = vpop.f32.mrb[20].mxu0 }
 0x4eb   : > { %v1323_v23 = vpack.c.bf16 %v2982_v22, %v2970_v47  ;;  %v2012_v24 = vpop.f32.mrb[21].mxu0 }
 0x4ec   : > { %v843_v25 = vpop.f32.mrb[22].mxu0  ;;  %v2226_v24 = vld [vmem:[#allocation10] sm:$0xff]  }
 0x4ed   : > { %v2013_v19 = vpop.f32.mrb[23].mxu0 }
 0x4f1   : > { %v912_v26 = vpop.xlane.xlu1 %911 }
 0x4f2   : > { %2273 = vrcp.f32 %v912_v26 }
 0x4f7   : > { %v942_v27 = vpop.trf.xlu1 }
 0x4f8   : > { %2023 = vmatmul.mubr.msk.bf16.vlgmr.msra.gmra.mrb[24].mxu0 %vm476_vm9, %v942_v27  ;;  %v2235_v27 = vld [vmem:[#allocation11] sm:$0xff]  }
 0x4f9   : > { %2034 = vmatprep.mubr.msk.bf16.mxu0 %vm2541_vm0, %v2540_v0 }
 0x4fc   : > { %v2274_v28 = vpop.eup %2273 }
 0x4fd   : > { %v914_v29 = vmul.f32 %v2274_v28, %v2270_v6 }
 0x4ff   : > { %v997_v5 = vpack.c.bf16 %v914_v29, %v914_v29 }
 0x501   : > { %2029 = vmatmul.mubr.msk.bf16.vlgmr.msra.gmra.mrb[12].mxu1 %vm429_vm7, %v997_v5 }
 0x502   : > { %2039 = vmatpush3.bf16.xpose.msra.mxu1 %v2224_v30  ;;  %2040 = vmatprep.mubr.msk.bf16.mxu1 %vm2541_vm0, %v2540_v0 }
 0x503   : > { %2050 = vmatprep.subr.bf16.mxu1 %v2540_v0 }
 0x509   : > { %2041 = vmatmul.mubr.bf16.vlgmr.msra.gmra.mrb[16].mxu1 %v2995_v32 }
 0x50a   : > { %2051 = vmatpush3.bf16.msra.mxu1 %v2224_v30  ;;  %2052 = vmatprep.mubr.msk.bf16.mxu1 %vm2541_vm0, %v2540_v0 }
 0x50b   : > { %2082 = vmatprep.subr.bf16.mxu1 %v2226_v24 }
 0x5cb   : > { %v990_v33 = vpop.f32.mrb[24].mxu0 }
 0x5cc   : > { %v2024_v34 = vpop.f32.mrb[25].mxu0 }
 0x5cd   : > { %v993_v35 = vpop.f32.mrb[26].mxu0  ;;  %v2227_v34 = vld [vmem:[#allocation10 + $0x8] sm:$0xff]  }
 0x5ce   : > { %v1041_v36 = vpack.c.bf16 %v993_v35, %v990_v33  ;;  %v2025_v37 = vpop.f32.mrb[27].mxu0  ;;  %v2234_v35 = vld [vmem:[%s2858_s23] sm:$0xff]  }
 0x5cf   : > { %v2228_v37 = vld [vmem:[#allocation10 + $0x10] sm:$0xff]  }
 0x5d0   : > { %2033 = vmatpush3.bf16.msra.mxu0 %v1041_v36  ;;  %v2237_v36 = vld [vmem:[#allocation11 + $0x8] sm:$0xff]  }
 0x5d1   : > { %2044 = vmatprep.subr.bf16.mxu0 %v2540_v0 }
 0x5d3   : > { %2035 = vmatmul.mubr.msk.bf16.vlgmr.msra.gmra.mrb[28].mxu0 %vm429_vm7, %v997_v5 }
 0x5d4   : > { %v3005_v39 = vpop.f32.mrb[12].mxu1  ;;  %2045 = vmatpush3.bf16.msra.mxu0 %v1190_v38  ;;  %2046 = vmatprep.mubr.msk.bf16.mxu0 %vm2541_vm0, %v2540_v0  ;;  %v2239_v38 = vld [vmem:[#allocation11 + $0x10] sm:$0xff]  }
 0x5d5   : > { %v2030_v44 = vpop.f32.mrb[13].mxu1  ;;  %2056 = vmatprep.subr.bf16.mxu0 %v2540_v0 }
 0x5d6   : > { %v1038_v45 = vpop.f32.mrb[14].mxu1  ;;  %v2230_v44 = vld [vmem:[#allocation10 + $0x20] sm:$0xff]  }
 0x5d7   : > { %v2031_v46 = vpop.f32.mrb[15].mxu1  ;;  %v2243_v45 = vld [vmem:[#allocation11 + $0x20] sm:$0xff]  }
 0x5d8   : > { %v2247_v46 = vld [vmem:[#allocation11 + $0x30] sm:$0xff]  }
 0x5dc   : > { %v1128_v48 = vpop.f32.mrb[16].mxu1 }
 0x5dd   : > { %v1139_v49 = vsel %vm1138_vm15, %v1128_v48, -1e+10  ;;  %v2042_v50 = vpop.f32.mrb[17].mxu1  ;;  %v2233_v48 = vld [vmem:[#allocation10 + $0x38] sm:$0xff]  }
 0x5de   : > { %v1140_v51 = vsel %vm429_vm7, %v1139_v49, -inf  ;;  %v1131_v52 = vpop.f32.mrb[18].mxu1  ;;  %v1320_v50 = vld [vmem:[%s2858_s23 + $0x8] sm:$0xf] }
 0x5df   : > { %v1151_v53 = vrot.slane %v1140_v51, 4  ;;  %v2043_v54 = vpop.f32.mrb[19].mxu1  ;;  %v1878_v52 = vcombine.low %v1320_v50, %v2995_v32  ;;  %v2246_v32 = vld [vmem:[#allocation13 + $0x28] sm:$0xff]  }
 0x5e0   : > { %v2240_v54 = vld [vmem:[#allocation13 + $0x10] sm:$0xff]  }
 0x5e1   : > { %v1152_v55 = vmax.f32 %v1140_v51, %v1151_v53  ;;  %v2238_v53 = vld [vmem:[#allocation13 + $0x8] sm:$0xff]  }
 0x5e3   : > { %v1153_v56 = vrot.slane %v1152_v55, 2 }
 0x5e5   : > { %v1154_v57 = vmax.f32 %v1152_v55, %v1153_v56  ;;  %v2242_v55 = vld [vmem:[#allocation13 + $0x18] sm:$0xff]   ;;  %v2244_v56 = vld [vmem:[#allocation13 + $0x20] sm:$0xff]  }
 0x5e7   : > { %v1155_v58 = vrot.slane %v1154_v57, 1 }
 0x5e9   : > { %v1156_v59 = vmax.f32 %v1154_v57, %v1155_v58  ;;  %v2248_v57 = vld [vmem:[#allocation13 + $0x30] sm:$0xff]   ;;  %v2250_v58 = vld [vmem:[#allocation13 + $0x38] sm:$0xff]  }
 0x5eb   : > { %v1157_v60 = vsub.f32 %v1139_v49, %v1156_v59 }
 0x5ed   : > { %v1158_v61 = vmul.f32 1.442695, %v1157_v60 }
 0x5ef   : > { %2275 = vpow2.f32 %v1158_v61 }
 0x5f9   : > { %v2276_v7 = vpop.eup %2275 }
 0x5fa   : > { %v1160_v8 = vsel %vm429_vm7, %v2276_v7, 0.0 }
 0x5fb   : > { %v1161_v62 = vrot.slane %v1160_v8, 4 }
 0x5fd   : > { %v1162_v63 = vadd.f32 %v1161_v62, %v1160_v8 }
 0x5ff   : > { %v1163_v1 = vrot.slane %v1162_v63, 2 }
 0x601   : > { %v1164_v2 = vadd.f32 %v1163_v1, %v1162_v63 }
 0x603   : > { %v1165_v3 = vrot.slane %v1164_v2, 1 }
 0x605   : > { %v1166_v4 = vadd.f32 %v1165_v3, %v1164_v2  ;;  %v1895_v3 = vld [vmem:[%s3094_s7] ss:$0 sm:$0xff] }
 0x607   : > { %2277 = vrcp.f32 %v1166_v4 }
 0x611   : > { %v2278_v6 = vpop.eup %2277 }
 0x612   : > { %v1168_v9 = vmul.f32 %v2278_v6, %v2276_v7 }
 0x614   : > { %v1169_v10 = vpack.c.bf16 %v1168_v9, %v1168_v9 }
 0x616   : > { %1170 = vxpose.xlu0.c.b16.start.end [1/1] (short) (narrow) %v1169_v10, 16 }
 0x623   : > { %1141 = vmax.xlane.f32.xlu0 %v1140_v51  ;;  %v2236_v51 = vld [vmem:[#allocation13] sm:$0xff]  }
 0x67c   : > { %v1178_v11 = vpop.trf.xlu0 }
 0x67d   : > { %2047 = vmatmul.mubr.msk.bf16.vlgmr.msra.gmra.mrb[32].mxu0 %vm476_vm9, %v1178_v11 }
 0x67e   : > { %2058 = vmatprep.mubr.msk.bf16.mxu0 %vm2541_vm0, %v2540_v0 }
 0x6a6   : > { %v3017_v12 = vpop.f32.mrb[28].mxu0 }
 0x6a7   : > { %v2036_v13 = vpop.f32.mrb[29].mxu0 }
 0x6a8   : > { %v1079_v14 = vpop.f32.mrb[30].mxu0 }
 0x6a9   : > { %v2037_v15 = vpop.f32.mrb[31].mxu0 }
 0x6b0   : > { %v1142_v16 = vpop.xlane.xlu0 %1141 }
 0x6b1   : > { %v1143_v17 = vsub.f32 %v1139_v49, %v1142_v16  ;;  %v2249_v49 = vld [vmem:[#allocation11 + $0x38] sm:$0xff]  }
 0x6b3   : > { %v1144_v18 = vmul.f32 1.442695, %v1143_v17 }
 0x6b5   : > { %2279 = vpow2.f32 %v1144_v18 }
 0x6bf   : > { %v2280_v20 = vpop.eup %2279 }
 0x6c0   : > { %v1146_v21 = vsel %vm429_vm7, %v2280_v20, 0.0 }
 0x6c1   : > { %1147 = vadd.xlane.f32.xlu1 %v1146_v21 }
 0x74e   : > { %v1148_v25 = vpop.xlane.xlu1 %1147 }
 0x74f   : > { %2281 = vrcp.f32 %v1148_v25 }
 0x750   : > { %v1226_v19 = vpop.f32.mrb[32].mxu0 }
 0x751   : > { %v2048_v0 = vpop.f32.mrb[33].mxu0 }
 0x752   : > { %v1229_v26 = vpop.f32.mrb[34].mxu0 }
 0x753   : > { %v1277_v28 = vpack.c.bf16 %v1229_v26, %v1226_v19  ;;  %v2049_v29 = vpop.f32.mrb[35].mxu0 }
 0x755   : > { %2057 = vmatpush3.bf16.msra.mxu0 %v1277_v28 }
 0x756   : > { %2062 = vmatprep.subr.bf16.mxu0 %v2235_v27 }
 0x759   : > { %v2282_v30 = vpop.eup %2281 }
 0x75a   : > { %v1150_v5 = vmul.f32 %v2282_v30, %v2280_v20 }
 0x75c   : > { %v1233_v33 = vpack.c.bf16 %v1150_v5, %v1150_v5 }
 0x75e   : > { %2053 = vmatmul.mubr.msk.bf16.vlgmr.msra.gmra.mrb[20].mxu1 %vm429_vm7, %v1233_v33  ;;  %2059 = vmatmul.mubr.msk.bf16.vlgmr.msra.gmra.mrb[36].mxu0 %vm429_vm7, %v1233_v33 }
 0x75f   : > { %2083 = vmatpush3.bf16.msra.mxu1 %v2226_v24  ;;  %2078 = vmatprep.mubr.bf16.mxu0 %v1321_v43  ;;  %v2232_v43 = vld [vmem:[#allocation10 + $0x30] sm:$0xff]  }
 0x760   : > { %2084 = vmatprep.subr.bf16.mxu1 %v2227_v34  ;;  %2098 = vmatprep.mubr.bf16.mxu1 %v2234_v35 }
 0x761   : > { %2063 = vmatpush3.bf16.msra.mxu0 %v2235_v27 }
 0x762   : > { %2064 = vmatprep.subr.bf16.mxu0 %v2237_v36 }
 0x763   : > { %2085 = vmatpush3.bf16.msra.mxu1 %v2227_v34 }
 0x764   : > { %2086 = vmatprep.subr.bf16.mxu1 %v2228_v37 }
 0x765   : > { %2065 = vmatpush3.bf16.msra.mxu0 %v2237_v36 }
 0x766   : > { %2066 = vmatprep.subr.bf16.mxu0 %v2239_v38 }
 0x767   : > { %2087 = vmatpush3.bf16.msra.mxu1 %v2228_v37 }
 0x768   : > { %2088 = vmatprep.subr.bf16.mxu1 %v2229_v40 }
 0x769   : > { %2067 = vmatpush3.bf16.msra.mxu0 %v2239_v38 }
 0x76a   : > { %2068 = vmatprep.subr.bf16.mxu0 %v2241_v41 }
 0x76b   : > { %2089 = vmatpush3.bf16.msra.mxu1 %v2229_v40 }
 0x76c   : > { %2090 = vmatprep.subr.bf16.mxu1 %v2230_v44 }
 0x76d   : > { %2069 = vmatpush3.bf16.msra.mxu0 %v2241_v41 }
 0x76e   : > { %2070 = vmatprep.subr.bf16.mxu0 %v2243_v45 }
 0x76f   : > { %2091 = vmatpush3.bf16.msra.mxu1 %v2230_v44 }
 0x770   : > { %2092 = vmatprep.subr.bf16.mxu1 %v2231_v31 }
 0x771   : > { %2071 = vmatpush3.bf16.msra.mxu0 %v2243_v45 }
 0x772   : > { %2072 = vmatprep.subr.bf16.mxu0 %v2245_v42 }
 0x773   : > { %2093 = vmatpush3.bf16.msra.mxu1 %v2231_v31 }
 0x774   : > { %2094 = vmatprep.subr.bf16.mxu1 %v2232_v43 }
 0x775   : > { %2073 = vmatpush3.bf16.msra.mxu0 %v2245_v42 }
 0x776   : > { %2074 = vmatprep.subr.bf16.mxu0 %v2247_v46 }
 0x777   : > { %2095 = vmatpush3.bf16.msra.mxu1 %v2232_v43 }
 0x778   : > { %2096 = vmatprep.subr.bf16.mxu1 %v2233_v48 }
 0x779   : > { %2075 = vmatpush3.bf16.msra.mxu0 %v2247_v46 }
 0x77a   : > { %2076 = vmatprep.subr.bf16.mxu0 %v2249_v49 }
 0x77b   : > { %2097 = vmatpush3.bf16.msra.mxu1 %v2233_v48 }
 0x77c   : > { %2102 = vmatprep.subr.bf16.mxu1 %v2236_v51 }
 0x77d   : > { %2077 = vmatpush3.bf16.msra.mxu0 %v2249_v49 }
 0x77e   : > { %2099 = vmatmul.mubr.bf16.vlgmr.msra.gmra.mrb[24].mxu1 %v1878_v52 }
 0x77f   : > { %2118 = vmatprep.mubr.bf16.mxu1 %v1323_v23  ;;  %2103 = vmatpush3.bf16.msra.mxu1 %v2236_v51 }
 0x780   : > { %2104 = vmatprep.subr.bf16.mxu1 %v2238_v53 }
 0x783   : > { %2105 = vmatpush3.bf16.msra.mxu1 %v2238_v53 }
 0x784   : > { %2106 = vmatprep.subr.bf16.mxu1 %v2240_v54 }
 0x787   : > { %2107 = vmatpush3.bf16.msra.mxu1 %v2240_v54 }
 0x788   : > { %2108 = vmatprep.subr.bf16.mxu1 %v2242_v55 }
 0x78b   : > { %2109 = vmatpush3.bf16.msra.mxu1 %v2242_v55 }
 0x78c   : > { %2110 = vmatprep.subr.bf16.mxu1 %v2244_v56 }
 0x78f   : > { %2111 = vmatpush3.bf16.msra.mxu1 %v2244_v56 }
 0x790   : > { %2112 = vmatprep.subr.bf16.mxu1 %v2246_v32 }
 0x793   : > { %2113 = vmatpush3.bf16.msra.mxu1 %v2246_v32 }
 0x794   : > { %2114 = vmatprep.subr.bf16.mxu1 %v2248_v57 }
 0x797   : > { %2115 = vmatpush3.bf16.msra.mxu1 %v2248_v57 }
 0x798   : > { %2116 = vmatprep.subr.bf16.mxu1 %v2250_v58 }
 0x79b   : > { %2117 = vmatpush3.bf16.msra.mxu1 %v2250_v58 }
 0x831   : > { %v1271_v47 = vpop.f32.mrb[20].mxu1  ;;  %v1312_v22 = vpop.f32.mrb[36].mxu0 }
 0x832   : > { %v1322_v23 = vpack.c.bf16 %v1271_v47, %v3005_v39  ;;  %v1324_v59 = vpack.c.bf16 %v1312_v22, %v3017_v12  ;;  %v2054_v60 = vpop.f32.mrb[21].mxu1  ;;  %v2060_v61 = vpop.f32.mrb[37].mxu0 }
 0x833   : > { %v1274_v7 = vpop.f32.mrb[22].mxu1  ;;  %v1315_v8 = vpop.f32.mrb[38].mxu0 }
 0x834   : > { %v2055_v62 = vpop.f32.mrb[23].mxu1  ;;  %v2061_v63 = vpop.f32.mrb[39].mxu0  ;;  %2079 = vmatmul.mubr.bf16.vlgmr.msra.gmra.mrb[40].mxu0 %v1322_v23  ;;  %2119 = vmatmul.mubr.bf16.vlgmr.msra.gmra.mrb[24].mxu1 %v1324_v59 }
 0x907   : > { %v2080_v1 = vpop.f32.mrb[40].mxu0  ;;  %v2120_v2 = vpop.f32.mrb[24].mxu1 }
 0x908   : > { %v2122_v4 = vadd.f32 %v2120_v2, %v2080_v1  ;;  %v1439_v39 = vpop.f32.mrb[41].mxu0  ;;  %v1661_v6 = vpop.f32.mrb[25].mxu1 }
 0x909   : > { %v2123_v9 = vadd.f32 %v1661_v6, %v1439_v39  ;;  %v2081_v10 = vpop.f32.mrb[42].mxu0  ;;  %v2121_v11 = vpop.f32.mrb[26].mxu1 }
 0x90a   : > { %v1689_v12 = vadd.f32 %v2122_v4, %v1895_v3  ;;  %v2124_v13 = vadd.f32 %v2121_v11, %v2081_v10  ;;  %v1442_v14 = vpop.f32.mrb[43].mxu0  ;;  %v1664_v15 = vpop.f32.mrb[27].mxu1 }
 0x90b   : > { %v1687_v16 = vadd.f32 %v2123_v9, %v1895_v3  ;;  %v2125_v17 = vadd.f32 %v1664_v15, %v1442_v14 }
 0x90c   : > { %1693 = vst [vmem:[%s362_s2 + $0x10] sm:$0xff] %v1689_v12  ;;  %v1690_v18 = vadd.f32 %v2124_v13, %v1895_v3 }
 0x90d   : > { %1691 = vst [vmem:[%s362_s2] sm:$0xff] %v1687_v16  ;;  %v1688_v20 = vadd.f32 %v2125_v17, %v1895_v3 }
 0x90e   : > { %1694 = vst [vmem:[%s362_s2 + $0x18] sm:$0xff] %v1690_v18 }
 0x90f   : > { %1692 = vst [vmem:[%s362_s2 + $0x8] sm:$0xff] %v1688_v20 }
 0x910   : > { %2462 = shalt.err (!%p2459_p11)
}
 0x911   : > { %s2463_s28 = scalar_lea.hbm %s3044_s10, 512  ;;  %s2467_s29 = scalar_lea.hbm %s3095_s8, 1024 }
 0x912   : > { %p2464_p3 = scmp.ne.s32.totalorder %s3044_s10, %s2463_s28  ;;  %p2468_p1 = scmp.lt.u32.totalorder %s3044_s10, %s3095_s8 }
 0x913   : > { %p2469_p6 = scmp.lt.u32.totalorder %s2467_s29, %s2463_s28  ;;  %p2471_p10 = scmp.lt.u32.totalorder %s2463_s28, %s3044_s10 }
 0x914   : > { %p2465_p7 = pnand %p2464_p3, %p2759_p13 }
 0x915   : > { %p2470_p9 = por %p2469_p6, %p2468_p1 }
 0x916   : > { %p2466_p5 = pneg %p2465_p7 }
 0x917   : > { %p2472_p12 = por %p2471_p10, %p2470_p9 }
 0x919   : > { %p2473_p8 = pnand %p2472_p12, %p2466_p5 }
 0x91b   : > { %2476 = shalt.err (!%p2473_p8)
}
 0x91c   : > { %s2543_s15 = smov 128   ;;  %s2544_s23 = smov 8  }
 0x91d   : > { %2146 = dma.vmem_to_hbm [thread:$0]  (%p2759_p13), %s3039_s26, 512, %s3044_s10, %s1696_s22, %s2543_s15, %s2543_s15, %s2544_s23  }
 0x91e PF: > { %s1724_s2 = sand.u32 1, %s2517_s0   ;;  %p3126_p2 = scmp.ne.s32.totalorder %s3107_s25, 0 }
 0x91f   : > { %p3127_p0 = scmp.ge.s32.totalorder %s2529_s21, 2  ;;  %s1725_s30 = scalar_lea.sflag [#allocation7], %s1724_s2 }
 0x921   : > { %p2166_p4 = pnand %p3127_p0, %p3126_p2 }
 0x923   : > { %2512 = dma.done.wait (!%p2166_p4), %s1725_s30, 512  }
 0x924   : > { %2514 = vsyncadd (!%p2166_p4), %s1725_s30, 4294966784  ;;  %p33_p11 = scmp.ge.s32.totalorder %s2745_s17, 4   ;;  %s3128_s0 = smov %s2521_s1 }
 0x925   : > { %s3129_s1 = smov %s2525_s20  ;;  %s3130_s20 = smov %s2755_s13 }
 0x926   : > { %s3131_s21 = smov %s2745_s17  ;;  %35 = sbr.rel (!%p33_p11) target bundleno = 31 (0x1f), region = 114 }
 0x92d   :  { %1730 = vsyncpa [#allocation6], 1 }
 0x92e   :  { %1732 = vsyncpa [#allocation6 + $0x1], 1 }
 0x92f   :  { %1733 = vsyncpa [#allocation9], 1 }
 0x930   :  { %1735 = vsyncpa [#allocation9 + $0x1], 1 }
 0x931   :  { %1736 = vsyncpa [#allocation12], 1 }
 0x932   :  { %1737 = vsyncpa [#allocation7], 1 }
 0x933   :  { %1739 = vsyncpa [#allocation7 + $0x1], 1 }

</bundles_post_ra>
